<compile_context>
chip_gen: v7x
topology: tpu7x:2x2x1
jax: 0.10.0
libtpu: 0.0.40
codegen_flags: <defaults>
</compile_context>

<pallas_src>
import functools
import math

import jax
import jax.numpy as jnp
from jax.experimental import pallas as pl
from jax.experimental.pallas import tpu as pltpu


# ---------------------------------------------------------------------------
# Kernels
# ---------------------------------------------------------------------------

def _gcn_layer1_kernel(a_ref, xw_ref, b1_ref, w2_ref, hw2_ref, acc_ref):
    """Layer-1 propagation with layer-2's feature transform fused in.

    grid = (row tile i, reduction tile k):
        acc[i]  += A[i, k] @ (X @ W1)[k]      (bf16 MXU, f32 accumulator)
        finalize: H = relu(acc + b1)           (eval-mode dropout == identity)
                  hw2[i] = H @ W2              (once per row tile, not per k)
    """
    k = pl.program_id(1)

    @pl.when(k == 0)
    def _():
        acc_ref[...] = jnp.zeros_like(acc_ref)

    acc_ref[...] += jnp.dot(a_ref[...], xw_ref[...],
                            preferred_element_type=jnp.float32)

    @pl.when(k == pl.num_programs(1) - 1)
    def _():
        h = jnp.maximum(acc_ref[...] + b1_ref[...], 0.0)
        # TODO(synk): training-mode dropout not implemented (eval identity);
        # would need pltpu.prng_seed / pltpu.prng_random_bits here.
        hw2_ref[...] = jnp.dot(h.astype(jnp.bfloat16), w2_ref[...],
                               preferred_element_type=jnp.float32
                               ).astype(hw2_ref.dtype)


def _gcn_layer2_kernel(a_ref, hw2_ref, b2_ref, o_ref, acc_ref, *, num_classes):
    """out[i] = log_softmax(sum_k A[i,k] @ (H @ W2)[k] + b2), lane-padded C."""
    k = pl.program_id(1)

    @pl.when(k == 0)
    def _():
        acc_ref[...] = jnp.zeros_like(acc_ref)

    acc_ref[...] += jnp.dot(a_ref[...], hw2_ref[...],
                            preferred_element_type=jnp.float32)

    @pl.when(k == pl.num_programs(1) - 1)
    def _():
        z = acc_ref[...] + b2_ref[...]
        # Mask the lane-padding columns out of the softmax normalizer.
        col = jax.lax.broadcasted_iota(jnp.int32, z.shape, 1)
        z = jnp.where(col < num_classes, z, -jnp.inf)
        m = jnp.max(z, axis=1, keepdims=True)
        s = z - m
        lse = jnp.log(jnp.sum(jnp.exp(s), axis=1, keepdims=True))
        o_ref[...] = s - lse


# ---------------------------------------------------------------------------
# Wrapper
# ---------------------------------------------------------------------------

def _round_up(v, m):
    return ((v + m - 1) // m) * m


def _pad2d(x, rows, cols):
    return jnp.pad(x, ((0, rows - x.shape[0]), (0, cols - x.shape[1])))


def _compiler_params(*operand_tile_bytes, scratch_bytes):
    # Double-buffered pipelined operands + resident accumulator + slack.
    est = 2 * sum(operand_tile_bytes) + scratch_bytes + (2 << 20)
    try:
        phys = pltpu.get_tpu_info().vmem_capacity_bytes
    except Exception:  # conservative fallback: assume v7x's 64 MiB
        phys = 64 << 20
    cap = min(96 << 20, (phys * 7) // 8)   # ~56 MiB on v7x, up to 96 MiB else
    return pltpu.CompilerParams(
        dimension_semantics=("parallel", "arbitrary"),
        vmem_limit_bytes=int(min(max(est, 8 << 20), cap)),
    )


def gcn_net_forward(a_norm, x, w1, b1, w2, b2, *, tm=512, tk=512):
    """Forward of Net: log_softmax(A @ relu(A @ (X W1) + b1) W2 + b2, dim=1)."""
    n = x.shape[0]
    h_dim = w1.shape[1]
    c = w2.shape[1]

    n128 = _round_up(n, 128)
    tm = min(tm, n128)
    tk = min(tk, n128)
    # Keep >= 2 row tiles so the "parallel" axis can feed both v7x TensorCores.
    if n128 >= 256:
        tm = min(tm, max(128, (n128 // 2) // 128 * 128))
    n_pad = _round_up(n, math.lcm(tm, tk))   # grid divides evenly for tm != tk

    h_pad = _round_up(h_dim, 128)
    c_pad = _round_up(c, 128)

    # Adjacency is already bf16 (built directly in bf16); just zero-pad it.
    # Padded A rows/cols are zero, which annihilates padded nodes in both
    # propagation passes.
    # TODO(synk): on v7x, an fp8 (e4m3) A stream would halve the dominant HBM
    # traffic; validate accuracy against the f32 reference before enabling.
    a_p = _pad2d(a_norm.astype(jnp.bfloat16), n_pad, n_pad)

    # Hoisted feature transform: one-shot, unpadded (F-wide) f32 XLA matmul,
    # then lane-pad/cast only the result that feeds the propagation kernel.
    xw = x.astype(jnp.float32) @ w1.astype(jnp.float32)
    xw_p = _pad2d(xw, n_pad, h_pad).astype(jnp.bfloat16)

    b1_p = _pad2d(b1.reshape(1, -1).astype(jnp.float32), 1, h_pad)
    w2_p = _pad2d(w2.astype(jnp.float32), h_pad, c_pad).astype(jnp.bfloat16)
    b2_p = _pad2d(b2.reshape(1, -1).astype(jnp.float32), 1, c_pad)

    grid = (n_pad // tm, n_pad // tk)
    n_row_tiles = grid[0]

    # ---- layer 1: HW2 = relu(A @ (X @ W1) + b1) @ W2 -----------------------
    cost1 = pl.CostEstimate(
        flops=2 * n_pad * n_pad * h_pad + 2 * n_pad * h_pad * c_pad,
        transcendentals=0,
        bytes_accessed=(a_p.size * 2 + xw_p.size * 2 * n_row_tiles
                        + w2_p.size * 2 + b1_p.size * 4 + n_pad * c_pad * 2),
    )
    hw2 = pl.pallas_call(
        _gcn_layer1_kernel,
        out_shape=jax.ShapeDtypeStruct((n_pad, c_pad), jnp.bfloat16),
        grid_spec=pltpu.PrefetchScalarGridSpec(
            num_scalar_prefetch=0,
            grid=grid,
            in_specs=[
                pl.BlockSpec((tm, tk), lambda i, k: (i, k)),         # A tile
                pl.BlockSpec((tk, h_pad), lambda i, k: (k, 0)),      # XW rows
                pl.BlockSpec((1, h_pad), lambda i, k: (0, 0)),       # b1
                pl.BlockSpec((h_pad, c_pad), lambda i, k: (0, 0)),   # W2
            ],
            out_specs=pl.BlockSpec((tm, c_pad), lambda i, k: (i, 0)),
            scratch_shapes=[pltpu.VMEM((tm, h_pad), jnp.float32)],
        ),
        compiler_params=_compiler_params(
            tm * tk * 2, tk * h_pad * 2, h_pad * 4, h_pad * c_pad * 2,
            tm * c_pad * 2,
            scratch_bytes=tm * h_pad * 4),
        cost_estimate=cost1,
    )(a_p, xw_p, b1_p, w2_p)

    # ---- layer 2: out = log_softmax(A @ HW2 + b2) --------------------------
    cost2 = pl.CostEstimate(
        flops=2 * n_pad * n_pad * c_pad,
        transcendentals=2 * n_pad * c_pad,
        bytes_accessed=(a_p.size * 2 + hw2.size * 2 * n_row_tiles
                        + b2_p.size * 4 + n_pad * c_pad * 4),
    )
    out_pad = pl.pallas_call(
        functools.partial(_gcn_layer2_kernel, num_classes=c),
        out_shape=jax.ShapeDtypeStruct((n_pad, c_pad), jnp.float32),
        grid_spec=pltpu.PrefetchScalarGridSpec(
            num_scalar_prefetch=0,
            grid=grid,
            in_specs=[
                pl.BlockSpec((tm, tk), lambda i, k: (i, k)),         # A tile
                pl.BlockSpec((tk, c_pad), lambda i, k: (k, 0)),      # HW2 rows
                pl.BlockSpec((1, c_pad), lambda i, k: (0, 0)),       # b2
            ],
            out_specs=pl.BlockSpec((tm, c_pad), lambda i, k: (i, 0)),
            scratch_shapes=[pltpu.VMEM((tm, c_pad), jnp.float32)],
        ),
        compiler_params=_compiler_params(
            tm * tk * 2, tk * c_pad * 2, c_pad * 4, tm * c_pad * 4,
            scratch_bytes=tm * c_pad * 4),
        cost_estimate=cost2,
    )(a_p, hw2, b2_p)

    return out_pad[:n, :c]


# ---------------------------------------------------------------------------
# Graph glue (matches PyG GCNConv's gcn_norm)
# ---------------------------------------------------------------------------

def build_normalized_adjacency(edge_index, num_nodes, dtype=jnp.bfloat16):
    """Dense D^-1/2 (A + I) D^-1/2 built directly in `dtype` (no f32 N^2 pass).

    Duplicate edges accumulate (like PyG's scatter-add degree computation) and
    self-loops are only added for nodes lacking one
    (add_remaining_self_loops semantics).
    """
    src = edge_index[0]
    dst = edge_index[1]
    ones = jnp.ones(src.shape, jnp.float32)
    # Which nodes already have a self-loop?
    self_hits = jnp.zeros((num_nodes,), jnp.float32).at[dst].add(
        jnp.where(src == dst, 1.0, 0.0))
    add_self = jnp.where(self_hits > 0, 0.0, 1.0)
    # In-degree (duplicates counted) including the conditionally-added loop.
    deg = jnp.zeros((num_nodes,), jnp.float32).at[dst].add(ones) + add_self
    dis = jnp.where(deg > 0, jax.lax.rsqrt(deg), 0.0)
    # Scatter the already-normalized edge weights straight into a dtype array.
    w = (dis[dst] * dis[src]).astype(dtype)
    a = jnp.zeros((num_nodes, num_nodes), dtype).at[dst, src].add(w)
    idx = jnp.arange(num_nodes)
    a = a.at[idx, idx].add((add_self * dis * dis).astype(dtype))
    return a


def glorot(key, shape):
    fan_in, fan_out = shape
    limit = jnp.sqrt(6.0 / (fan_in + fan_out))
    return jax.random.uniform(key, shape, jnp.float32, -limit, limit)


def _reference(a, x, w1, b1, w2, b2):
    a = a.astype(jnp.float32)
    h = jnp.maximum(a @ (x @ w1) + b1, 0.0)
    z = a @ (h @ w2) + b2
    return jax.nn.log_softmax(z, axis=1)


if __name__ == "__main__":
    N_NODES = 1024    # exercises a (2, 2) grid at tm=tk=512
    N_FEAT = 16       # pNFeatures
    N_NEURONS = 64    # pNNeurons
    N_CLASSES = 4     # numberOfClasses
    N_EDGES = 4096

    key = jax.random.PRNGKey(0)
    k_x, k_e, k_w1, k_w2 = jax.random.split(key, 4)

    # Node features [N, F].
    x = jax.random.normal(k_x, (N_NODES, N_FEAT), dtype=jnp.float32)

    # Random undirected edges (both directions), [2, 2E].
    src = jax.random.randint(k_e, (N_EDGES,), 0, N_NODES, dtype=jnp.int32)
    dst = jax.random.randint(jax.random.fold_in(k_e, 1), (N_EDGES,), 0,
                             N_NODES, dtype=jnp.int32)
    edge_index = jnp.stack(
        [jnp.concatenate([src, dst]), jnp.concatenate([dst, src])], axis=0)

    # GCNConv init: glorot weight, zero bias.
    w1 = glorot(k_w1, (N_FEAT, N_NEURONS))
    b1 = jnp.zeros((1, N_NEURONS), dtype=jnp.float32)
    w2 = glorot(k_w2, (N_NEURONS, N_CLASSES))
    b2 = jnp.zeros((1, N_CLASSES), dtype=jnp.float32)

    a_norm = build_normalized_adjacency(edge_index, N_NODES)

    out = gcn_net_forward(a_norm, x, w1, b1, w2, b2)
    out = jax.block_until_ready(out)

    assert out.shape == (N_NODES, N_CLASSES)
    # log_softmax rows must sum (in prob space) to 1.
    row_prob_sums = jnp.sum(jnp.exp(out), axis=1)
    assert bool(jnp.all(jnp.abs(row_prob_sums - 1.0) < 1e-3))
    # Loose check vs an f32 dense reference (kernel streams bf16 operands).
    max_err = float(jnp.max(jnp.abs(
        out - _reference(a_norm, x, w1, b1, w2, b2))))
    assert max_err < 0.1, f"max abs error vs reference: {max_err}"

    print("KERNEL_OK")
</pallas_src>

<mosaic_0001>
module attributes {stable_mosaic.version = 11 : i64} {
  func.func @_gcn_layer1_kernel(%arg0: i32, %arg1: i32, %arg2: memref<512x512xbf16, #tpu.memory_space<vmem>>, %arg3: memref<512x128xbf16, #tpu.memory_space<vmem>>, %arg4: memref<1x128xf32, #tpu.memory_space<vmem>>, %arg5: memref<128x128xbf16, #tpu.memory_space<vmem>>, %arg6: memref<512x128xbf16, #tpu.memory_space<vmem>>, %arg7: memref<512x128xf32, #tpu.memory_space<vmem>>) attributes {dimension_semantics = [#tpu.dimension_semantics<parallel>, #tpu.dimension_semantics<arbitrary>], iteration_bounds = array<i64: 2, 2>, scalar_prefetch = 0 : i64, scratch_operands = 1 : i64, tpu.core_type = #tpu.core_type<tc>, window_params = [{transform_indices = @transform_0, window_bounds = array<i64: 512, 512>}, {transform_indices = @transform_1, window_bounds = array<i64: 512, 128>}, {pipeline_mode = #tpu.pipeline_mode<synchronous>, transform_indices = @transform_2, window_bounds = array<i64: 1, 128>}, {pipeline_mode = #tpu.pipeline_mode<synchronous>, transform_indices = @transform_3, window_bounds = array<i64: 128, 128>}, {transform_indices = @transform_4, window_bounds = array<i64: 512, 128>}]} {
    %c0_i32 = arith.constant 0 : i32
    %0 = arith.cmpi eq, %arg1, %c0_i32 : i32
    %1 = arith.extui %0 : i1 to i32
    %c0_i32_0 = arith.constant 0 : i32
    %2 = arith.cmpi ne, %1, %c0_i32_0 : i32
    scf.if %2 {
      %cst_9 = arith.constant 0.000000e+00 : f32
      %12 = vector.broadcast %cst_9 : f32 to vector<512x128xf32>
      %c0_10 = arith.constant 0 : index
      %c0_11 = arith.constant 0 : index
      %13 = vector.load %arg7[%c0_10, %c0_11] : memref<512x128xf32, #tpu.memory_space<vmem>>, vector<512x128xf32>
      tpu.vector_store %arg7[%c0_10, %c0_11], %12 {strides = array<i32>} : memref<512x128xf32, #tpu.memory_space<vmem>>, vector<512x128xf32>,
    } else {
    }
    %c0 = arith.constant 0 : index
    %c0_1 = arith.constant 0 : index
    %3 = vector.load %arg7[%c0, %c0_1] : memref<512x128xf32, #tpu.memory_space<vmem>>, vector<512x128xf32>
    %c0_2 = arith.constant 0 : index
    %c0_3 = arith.constant 0 : index
    %4 = vector.load %arg2[%c0_2, %c0_3] : memref<512x512xbf16, #tpu.memory_space<vmem>>, vector<512x512xbf16>
    %c0_4 = arith.constant 0 : index
    %c0_5 = arith.constant 0 : index
    %5 = vector.load %arg3[%c0_4, %c0_5] : memref<512x128xbf16, #tpu.memory_space<vmem>>, vector<512x128xbf16>
    %cst = arith.constant dense<0.000000e+00> : vector<512x128xf32>
    %6 = tpu.matmul %4, %5, %cst {dimension_numbers = #tpu.dot_dimension_numbers<[1], [0], [0], [1], [0, 0, 1, 1], [], []>} : vector<512x512xbf16>, vector<512x128xbf16>, vector<512x128xf32> -> vector<512x128xf32>
    %7 = arith.addf %3, %6 : vector<512x128xf32>
    %c0_6 = arith.constant 0 : index
    %c0_7 = arith.constant 0 : index
    %8 = vector.load %arg7[%c0_6, %c0_7] : memref<512x128xf32, #tpu.memory_space<vmem>>, vector<512x128xf32>
    tpu.vector_store %arg7[%c0_6, %c0_7], %7 {strides = array<i32>} : memref<512x128xf32, #tpu.memory_space<vmem>>, vector<512x128xf32>,
    %c1_i32 = arith.constant 1 : i32
    %9 = arith.cmpi eq, %arg1, %c1_i32 : i32
    %10 = arith.extui %9 : i1 to i32
    %c0_i32_8 = arith.constant 0 : i32
    %11 = arith.cmpi ne, %10, %c0_i32_8 : i32
    scf.if %11 {
      %c0_9 = arith.constant 0 : index
      %c0_10 = arith.constant 0 : index
      %12 = vector.load %arg7[%c0_9, %c0_10] : memref<512x128xf32, #tpu.memory_space<vmem>>, vector<512x128xf32>
      %c0_11 = arith.constant 0 : index
      %c0_12 = arith.constant 0 : index
      %13 = vector.load %arg4[%c0_11, %c0_12] : memref<1x128xf32, #tpu.memory_space<vmem>>, vector<1x128xf32>
      %14 = vector.broadcast %13 : vector<1x128xf32> to vector<512x128xf32>
      %15 = arith.addf %12, %14 : vector<512x128xf32>
      %cst_13 = arith.constant 0.000000e+00 : f32
      %16 = vector.broadcast %cst_13 : f32 to vector<512x128xf32>
      %17 = arith.maximumf %15, %16 : vector<512x128xf32>
      %18 = arith.truncf %17 : vector<512x128xf32> to vector<512x128xbf16>
      %c0_14 = arith.constant 0 : index
      %c0_15 = arith.constant 0 : index
      %19 = vector.load %arg5[%c0_14, %c0_15] : memref<128x128xbf16, #tpu.memory_space<vmem>>, vector<128x128xbf16>
      %cst_16 = arith.constant dense<0.000000e+00> : vector<512x128xf32>
      %20 = tpu.matmul %18, %19, %cst_16 {dimension_numbers = #tpu.dot_dimension_numbers<[1], [0], [0], [1], [0, 0, 1, 1], [], []>} : vector<512x128xbf16>, vector<128x128xbf16>, vector<512x128xf32> -> vector<512x128xf32>
      %21 = arith.truncf %20 : vector<512x128xf32> to vector<512x128xbf16>
      %c0_17 = arith.constant 0 : index
      %c0_18 = arith.constant 0 : index
      %22 = vector.load %arg6[%c0_17, %c0_18] : memref<512x128xbf16, #tpu.memory_space<vmem>>, vector<512x128xbf16>
      tpu.vector_store %arg6[%c0_17, %c0_18], %21 {strides = array<i32>} : memref<512x128xbf16, #tpu.memory_space<vmem>>, vector<512x128xbf16>,
    } else {
    }
    return
  }
  func.func @transform_0(%arg0: i32, %arg1: i32) -> (i32, i32) {
    %c0_i32 = arith.constant 0 : i32
    return %arg0, %arg1 : i32, i32
  }
  func.func @transform_1(%arg0: i32, %arg1: i32) -> (i32, i32) {
    %c0_i32 = arith.constant 0 : i32
    %c0_i32_0 = arith.constant 0 : i32
    return %arg1, %c0_i32 : i32, i32
  }
  func.func @transform_2(%arg0: i32, %arg1: i32) -> (i32, i32) {
    %c0_i32 = arith.constant 0 : i32
    %c0_i32_0 = arith.constant 0 : i32
    %c0_i32_1 = arith.constant 0 : i32
    return %c0_i32, %c0_i32_0 : i32, i32
  }
  func.func @transform_3(%arg0: i32, %arg1: i32) -> (i32, i32) {
    %c0_i32 = arith.constant 0 : i32
    %c0_i32_0 = arith.constant 0 : i32
    %c0_i32_1 = arith.constant 0 : i32
    return %c0_i32, %c0_i32_0 : i32, i32
  }
  func.func @transform_4(%arg0: i32, %arg1: i32) -> (i32, i32) {
    %c0_i32 = arith.constant 0 : i32
    %c0_i32_0 = arith.constant 0 : i32
    return %arg0, %c0_i32 : i32, i32
  }
}

</mosaic_0001>

<bundles_post_ra>
// kernel: tpu_custom_call.1
= control target key start
LH: loop header
LB: loop body
LE: loop exit
PB: predicated region body
PF: predicated region fallthrough
CT: control target
= control target key end

     0   :  { %s5355_s0 = inlined_call_operand.hbm [shape: bf16[1024,1024], index: 0, kind: input, shape index: {}]   ;;  %s5356_s1 = inlined_call_operand.hbm [shape: bf16[1024,128], index: 1, kind: input, shape index: {}]   ;;  %s5357_s2 = inlined_call_operand.hbm [shape: f32[1,128], index: 2, kind: input, shape index: {}]   ;;  %s5358_s3 = inlined_call_operand.hbm [shape: bf16[128,128], index: 3, kind: input, shape index: {}]   ;;  %s5359_s4 = inlined_call_operand.hbm [shape: bf16[1024,128], index: 4, kind: output, shape index: {}]  }
   0x1   :  { %5379 = sst [smem:[#allocation26_spill]] %s5355_s0 }
   0x2   :  { %5380 = sst [smem:[#allocation27_spill]] %s5357_s2 }
   0x3   :  { %5381 = sst [smem:[#allocation28_spill]] %s5358_s3 }
   0x4   :  { %5382 = sst [smem:[#allocation29_spill]] %s5359_s4 }
   0x5   :  { %9 = vsyncpa [#allocation4], 0 }
   0x6   :  { %11 = vsyncpa [#allocation4 + $0x1], 0 }
   0x7   :  { %12 = vsyncpa [#allocation7], 0 }
   0x8   :  { %14 = vsyncpa [#allocation7 + $0x1], 0 }
   0x9   :  { %15 = vsyncpa [#allocation10], 0 }
   0xa   :  { %16 = vsyncpa [#allocation5], 0 }
   0xb   :  { %18 = vsyncpa [#allocation5 + $0x1], 0  ;;  %s4580_s15 = smov 0   ;;  %s4582_s16 = smov 0  }
   0xc   :  { %s4584_s17 = smov 0   ;;  %s4586_s18 = smov 0  }
   0xd   :  { %s4588_s19 = smov 0   ;;  %s4590_s20 = smov 0  }
   0xe   :  { %s4592_s21 = smov 0   ;;  %s4594_s22 = smov 0  }
   0xf   :  { %s4596_s23 = smov 0   ;;  %s4598_s24 = smov 0  }
  0x10   :  { %s4600_s25 = smov 0   ;;  %s4602_s26 = smov 0  }
  0x11   :  { %s4604_s27 = smov 0   ;;  %s4606_s28 = smov 0  }
  0x12 LB: > { %5383 = sst [smem:[#allocation17_spill]] %s4487_s15  ;;  %s4647_s29 = sadd.s32 4294967295, %s4539_s28   ;;  %s4539_s28 = sphi %s4606_s28, %s24_s28   ;;  %s4535_s27 = sphi %s4604_s27, %s5431_s27   ;;  %s4531_s26 = sphi %s4602_s26, %s5442_s26   ;;  %s4527_s25 = sphi %s4600_s25, %s5429_s25   ;;  %s4523_s24 = sphi %s4598_s24, %s5441_s24   ;;  %s4519_s23 = sphi %s4596_s23, %s5440_s23   ;;  %s4515_s22 = sphi %s4594_s22, %s5439_s22   ;;  %s4511_s21 = sphi %s4592_s21, %s5438_s21   ;;  %s4507_s20 = sphi %s4590_s20, %s5437_s20   ;;  %s4503_s19 = sphi %s4588_s19, %s5436_s19   ;;  %s4499_s18 = sphi %s4586_s18, %s5435_s18   ;;  %s4495_s17 = sphi %s4584_s17, %s5434_s17   ;;  %s4491_s16 = sphi %s4582_s16, %s5433_s16   ;;  %s4487_s15 = sphi %s4580_s15, %s5428_s15  }
  0x13   : > { %5384 = sst [smem:[#allocation18_spill]] %s4491_s16  ;;  %s3219_s30 = sadd.s32 4294967294, %s4539_s28  }
  0x14   : > { %5385 = sst [smem:[#allocation19_spill]] %s4523_s24  ;;  %p58_p0 = scmp.ne.s32.totalorder %s4515_s22, %s4511_s21 }
  0x15   : > { %5386 = sst [smem:[#allocation20_spill]] %s4527_s25  ;;  %p5363_p1 = scmp.eq.s32.totalorder %s4647_s29, 0 }
  0x16   : > { %5387 = sst [smem:[#allocation21_spill]] %s4535_s27  ;;  %p84_p2 = scmp.ne.s32.totalorder %s4503_s19, %s4499_s18 }
  0x17   : > { %p4656_p3 = por %p5363_p1, %p58_p0  ;;  %p149_p4 = scmp.ne.s32.totalorder %s4495_s17, %s4491_s16 }
  0x18   : > { %p4664_p5 = por %p84_p2, %p5363_p1  ;;  %p150_p6 = scmp.eq.s32.totalorder %s4647_s29, 3 }
  0x19   : > { %s5388_s6 = scalar_select %p4656_p3, 1, 0 }
  0x1a   : > { %s5389_s7 = scalar_select %p4664_p5, 1, 0 }
  0x1b   : > { %p155_p7 = scmp.ne.s32.totalorder %s4491_s16, %s4487_s15  ;;  %p156_p8 = scmp.eq.s32.totalorder %s3219_s30, 3 }
  0x1c   : > { %p4671_p9 = por %p150_p6, %p149_p4  ;;  %p3220_p10 = scmp.ge.s32.totalorder %s4539_s28, 1 }
  0x1d   : > { %p4676_p11 = por %p156_p8, %p155_p7  ;;  %p163_p12 = scmp.lt.s32.totalorder %s4539_s28, 5 }
  0x1e   : > { %s5390_s8 = scalar_select %p4671_p9, 1, 0 }
  0x1f   : > { %s5392_s9 = scalar_select %p4676_p11, 1, 0 }
  0x20   : > { %5391 = sst [smem:[#allocation22_spill]] %s5390_s8  ;;  %p4681_p13 = pnand %p3220_p10, %p163_p12 }
  0x21   : > { %5393 = sst [smem:[#allocation23_spill]] %s5392_s9  ;;  %s4541_s11 = smov [#allocation8]  }
  0x22   : > { %s5394_s10 = scalar_select %p4681_p13, 1, 0 }
  0x23   : > { %s176_s12 = sshll.u32 %s4541_s11, 4  ;;  %p3886_p0 = pneg %p4681_p13  ;;  %s177_s12 = int_to_ptr.vmem [resolvable:$true] %s176_s12 }
  0x24   : > { %s4542_s13 = smov [#allocation9]   ;;  %s5396_s2 = sld [smem:[#allocation27_spill]] }
  0x25   : > { %s186_s14 = sshll.u32 %s4542_s13, 4  ;;  %p4689_p2 = pnand %p3886_p0, %p5363_p1  ;;  %s4693_s14 = int_to_ptr.vmem [resolvable:$true] %s186_s14 }
  0x27   : > { %p4267_p6 = pneg %p4689_p2 }
  0x2a   : > { %s4265_s5 = scalar_lea.hbm %s5396_s2, 16 }
  0x2b   : > { %p4266_p4 = scmp.ne.s32.totalorder %s5396_s2, %s4265_s5  ;;  %p4272_p10 = scmp.lt.u32.totalorder %s4265_s5, %s5396_s2 }
  0x2d   : > { %p4268_p7 = pnand %p4267_p6, %p4266_p4 }
  0x2f   : > { %p4269_p8 = pneg %p4268_p7 }
  0x31   : > { %p4274_p12 = pnand %p4272_p10, %p4269_p8 }
  0x33   : > { %4277 = shalt.err (!%p4274_p12)
}
  0x34   : > { %s4278_s4 = scalar_lea.vmem %s177_s12, 16  ;;  %s4285_s9 = scalar_lea.vmem %s177_s12, 32 }
  0x35   : > { %p4279_p0 = scmp.ne.s32.totalorder %s177_s12, %s4278_s4  ;;  %p4286_p9 = scmp.lt.s32.totalorder %s177_s12, %s177_s12 }
  0x36   : > { %p4287_p5 = scmp.lt.s32.totalorder %s4285_s9, %s4278_s4 }
  0x37   : > { %p4281_p1 = pnand %p4279_p0, %p4267_p6 }
  0x38   : > { %p4288_p3 = por %p4287_p5, %p4286_p9 }
  0x39   : > { %p4282_p11 = pneg %p4281_p1 }
  0x3b   : > { %p4289_p13 = pnand %p4288_p3, %p4282_p11 }
  0x3d   : > { %4292 = shalt.err (!%p4289_p13)
}
  0x3e   : > { %3889 = dma.hbm_to_vmem [thread:$0]  (!%p4689_p2), %s5396_s2, 16, %s177_s12, [#allocation7]  }
  0x3f   : > { %s5397_s3 = sld [smem:[#allocation28_spill]] }
  0x45   : > { %s4293_s11 = scalar_lea.hbm %s5397_s3, 1024 }
  0x46   : > { %p4294_p1 = scmp.ne.s32.totalorder %s5397_s3, %s4293_s11  ;;  %p4300_p9 = scmp.lt.u32.totalorder %s4293_s11, %s5397_s3 }
  0x48   : > { %p4296_p5 = pnand %p4294_p1, %p4267_p6 }
  0x4a   : > { %p4297_p3 = pneg %p4296_p5 }
  0x4c   : > { %p4302_p11 = pnand %p4300_p9, %p4297_p3 }
  0x4e   : > { %4305 = shalt.err (!%p4302_p11)
}
  0x4f   : > { %s4306_s12 = scalar_lea.vmem %s4693_s14, 1024  ;;  %p4314_p8 = scmp.lt.s32.totalorder %s4693_s14, %s4693_s14 }
  0x50   : > { %p4307_p13 = scmp.ne.s32.totalorder %s4693_s14, %s4306_s12  ;;  %p4315_p10 = scmp.lt.s32.totalorder %s4306_s12, %s4306_s12 }
  0x52   : > { %p4309_p4 = pnand %p4307_p13, %p4267_p6  ;;  %p4316_p12 = por %p4315_p10, %p4314_p8 }
  0x54   : > { %p4310_p7 = pneg %p4309_p4 }
  0x56   : > { %p4317_p0 = pnand %p4316_p12, %p4310_p7 }
  0x58   : > { %4320 = shalt.err (!%p4317_p0)
}
  0x59   : > { %s5370_s8 = smov 64   ;;  %s5371_s21 = smov 4  }
  0x5a   : > { %3892 = dma.hbm_to_vmem [thread:$0]  (!%p4689_p2), %s5397_s3, 1024, %s4693_s14, [#allocation10], %s5370_s8, %s5370_s8, %s5371_s21  }
  0x5b   : > { %s33_s30 = sadd.s32 1, %s4531_s26  ;;  %s36_s11 = sadd.s32 1, %s4535_s27 }
  0x5c   : > { %p34_p6 = scmp.ge.s32.totalorder %s33_s30, 2  ;;  %s45_s13 = sadd.s32 1, %s4519_s23 }
  0x5d   : > { %p52_p1 = scmp.ne.s32.totalorder %s4519_s23, %s4515_s22  ;;  %p5377_p5 = scmp.eq.s32.totalorder %s4539_s28, 0 }
  0x5e   : > { %s5444_s30 = smov (%p34_p6, %s33_s30), 0  ;;  %s5446_s11 = smov (!%p34_p6, %s36_s11), %s4535_s27 }
  0x5f   : > { %5398 = sst [smem:[#allocation24_spill]] %s5444_s30  ;;  %s4756_s18 = ssub.s32 %s4531_s26, %s5444_s30 }
  0x60   : > { %p4760_p2 = por %p5377_p5, %p52_p1  ;;  %p38_p3 = scmp.ge.s32.totalorder %s5446_s11, 2 }
  0x61   : > { %p69_p9 = scmp.eq.s32.totalorder %s4756_s18, 0  ;;  %p5376_p11 = scmp.lt.s32.totalorder %s4539_s28, 4 }
  0x62   : > { %s200_s4 = sand.u32 1, %s4519_s23   ;;  %s5448_s11 = smov (%p38_p3, %s5446_s11), 0 }
  0x63   : > { %5400 = sst [smem:[#allocation25_spill]] %s5448_s11  ;;  %s3224_s9 = sshll.u32 %s200_s4, 10 }
  0x64   : > { %s40_s12 = ssub.s32 %s4535_s27, %s5448_s11  ;;  %s3226_s5 = sshll.u32 %s4531_s26, 2 }
  0x65   : > { %s42_s15 = sor.u32 %s4756_s18, %s40_s12  ;;  %p137_p13 = scmp.eq.s32.totalorder %s40_s12, 0 }
  0x66   : > { %p43_p4 = scmp.eq.s32.totalorder %s42_s15, 0  ;;  %s5401_s8 = sadd.s32 1, %s4495_s17 }
  0x67   : > { %s4776_s21 = scalar_select %p137_p13, %s4495_s17, %s5401_s8  }
  0x68   : > { %s4779_s2 = scalar_select %p43_p4, %s4519_s23, %s45_s13  }
  0x69   : > { %s3478_s3 = sshll.u32 %s4535_s27, 9  ;;  %s204_s30 = scalar_lea.vmem [#allocation3], %s3224_s9 }
  0x6a   : > { %s214_s25 = sshll.u32 %s204_s30, 4  ;;  %s211_s24 = sadd.s32 %s3478_s3, %s3226_s5  ;;  %s4782_s25 = int_to_ptr.vmem [resolvable:$true] %s214_s25 }
  0x6b   : > { %s3228_s16 = sshll.u32 %s211_s24, 6  ;;  %p4788_p7 = pnand %p5376_p11, %p4760_p2 }
  0x6c   : > { %s5403_s0 = sld [smem:[#allocation26_spill]]  ;;  %s4797_s3 = scalar_lea.sflag [#allocation4], %s200_s4 }
  0x6d   : > { %p4323_p10 = pneg %p4788_p7 }
  0x72   : > { %s4795_s8 = scalar_lea.hbm %s5403_s0, %s3228_s16  ;;  %s4326_s14 = scalar_lea.hbm %s5403_s0, 65536 }
  0x73   : > { %s4321_s24 = scalar_lea.hbm %s4795_s8, 16384  ;;  %p4327_p6 = scmp.lt.u32.totalorder %s4795_s8, %s5403_s0 }
  0x74   : > { %p4322_p8 = scmp.ne.s32.totalorder %s4795_s8, %s4321_s24  ;;  %p4328_p1 = scmp.lt.u32.totalorder %s4326_s14, %s4321_s24 }
  0x75   : > { %p4330_p3 = scmp.lt.u32.totalorder %s4321_s24, %s4795_s8 }
  0x76   : > { %p4324_p12 = pnand %p4323_p10, %p4322_p8  ;;  %p4329_p2 = por %p4328_p1, %p4327_p6 }
  0x78   : > { %p4325_p0 = pneg %p4324_p12  ;;  %p4331_p13 = por %p4330_p3, %p4329_p2 }
  0x7a   : > { %p4332_p4 = pnand %p4331_p13, %p4325_p0 }
  0x7c   : > { %4335 = shalt.err (!%p4332_p4)
}
  0x7d   : > { %s4336_s4 = scalar_lea.vmem %s4782_s25, 16384  ;;  %s4545_s5 = smov [#allocation3]  }
  0x7e   : > { %p4337_p8 = scmp.ne.s32.totalorder %s4782_s25, %s4336_s4  ;;  %s4341_s12 = sshll.u32 %s4545_s5, 4  ;;  %s4342_s12 = int_to_ptr.vmem [resolvable:$false] %s4341_s12 }
  0x7f   : > { %s4343_s15 = scalar_lea.vmem %s4342_s12, 32768  ;;  %p4344_p5 = scmp.lt.s32.totalorder %s4782_s25, %s4342_s12 }
  0x80   : > { %p4339_p12 = pnand %p4337_p8, %p4323_p10  ;;  %p4345_p6 = scmp.lt.s32.totalorder %s4343_s15, %s4336_s4 }
  0x82   : > { %p4340_p11 = pneg %p4339_p12  ;;  %p4346_p1 = por %p4345_p6, %p4344_p5 }
  0x84   : > { %p4347_p2 = pnand %p4346_p1, %p4340_p11 }
  0x86   : > { %4350 = shalt.err (!%p4347_p2)
}
  0x87   : > { %s4546_s24 = smov 512   ;;  %s4547_s30 = smov 256  }
  0x88   : > { %s4548_s13 = smov 16   ;;  %s224_s14 = sand.u32 1, %s4539_s28  }
  0x89   : > { %3896 = dma.hbm_to_vmem [thread:$0]  (!%p4788_p7), %s4795_s8, 16384, %s4782_s25, %s4797_s3, %s4546_s24, %s4547_s30, %s4548_s13  }
  0x8a   : > { %s71_s16 = sadd.s32 1, %s4507_s20  ;;  %p78_p5 = scmp.ne.s32.totalorder %s4507_s20, %s4503_s19 }
  0x8b   : > { %s4832_s9 = scalar_select %p69_p9, %s4507_s20, %s71_s16  }
  0x8c   : > { %p5404_p11 = scmp.eq.s32.totalorder %s4539_s28, 0  ;;  %s226_s4 = sand.u32 1, %s4507_s20  }
  0x8d   : > { %s3479_s5 = sshll.u32 %s4531_s26, 12  ;;  %s3229_s12 = sshll.u32 %s226_s4, 8 }
  0x8e   : > { %p80_p10 = por %p78_p5, %p5404_p11  ;;  %s4841_s27 = scalar_lea.hbm %s5356_s1, %s3479_s5 }
  0x8f   : > { %p5405_p0 = scmp.lt.s32.totalorder %s4539_s28, 4  ;;  %s228_s11 = scalar_lea.vmem [#allocation6], %s3229_s12 }
  0x90   : > { %s235_s18 = sshll.u32 %s228_s11, 4  ;;  %s4851_s8 = scalar_lea.sflag [#allocation7], %s224_s14  ;;  %s4849_s18 = int_to_ptr.vmem [resolvable:$true] %s235_s18 }
  0x91   : > { %p4845_p7 = pnand %p5405_p0, %p80_p10  ;;  %s4351_s0 = scalar_lea.hbm %s4841_s27, 4096 }
  0x92   : > { %p4352_p9 = scmp.ne.s32.totalorder %s4841_s27, %s4351_s0  ;;  %s4356_s30 = scalar_lea.hbm %s5356_s1, 8192 }
  0x93   : > { %p4353_p3 = pneg %p4845_p7  ;;  %p4357_p8 = scmp.lt.u32.totalorder %s4841_s27, %s5356_s1 }
  0x94   : > { %p4358_p12 = scmp.lt.u32.totalorder %s4356_s30, %s4351_s0  ;;  %p4360_p1 = scmp.lt.u32.totalorder %s4351_s0, %s4841_s27 }
  0x95   : > { %p4354_p13 = pnand %p4353_p3, %p4352_p9 }
  0x96   : > { %p4359_p6 = por %p4358_p12, %p4357_p8 }
  0x97   : > { %p4355_p4 = pneg %p4354_p13 }
  0x98   : > { %p4361_p2 = por %p4360_p1, %p4359_p6 }
  0x9a   : > { %p4362_p5 = pnand %p4361_p2, %p4355_p4 }
  0x9c   : > { %4365 = shalt.err (!%p4362_p5)
}
  0x9d   : > { %s4366_s14 = scalar_lea.vmem %s4849_s18, 4096  ;;  %s4549_s4 = smov [#allocation6]  }
  0x9e   : > { %p4367_p11 = scmp.ne.s32.totalorder %s4849_s18, %s4366_s14  ;;  %s4371_s5 = sshll.u32 %s4549_s4, 4  ;;  %s4372_s5 = int_to_ptr.vmem [resolvable:$false] %s4371_s5 }
  0x9f   : > { %s4373_s12 = scalar_lea.vmem %s4372_s5, 8192  ;;  %p4374_p9 = scmp.lt.s32.totalorder %s4849_s18, %s4372_s5 }
  0xa0   : > { %p4369_p10 = pnand %p4367_p11, %p4353_p3  ;;  %p4375_p13 = scmp.lt.s32.totalorder %s4373_s12, %s4366_s14 }
  0xa2   : > { %p4370_p0 = pneg %p4369_p10  ;;  %p4376_p8 = por %p4375_p13, %p4374_p9 }
  0xa4   : > { %p4377_p12 = pnand %p4376_p8, %p4370_p0 }
  0xa6   : > { %4380 = shalt.err (!%p4377_p12)
}
  0xa7   : > { %s5407_s15 = smov 4   ;;  %s5408_s11 = smov 64  }
  0xa8   : > { %3899 = dma.hbm_to_vmem [thread:$0]  (!%p4845_p7), %s4841_s27, 4096, %s4849_s18, %s4851_s8, %s5408_s11, %s5408_s11, %s5407_s15  }
  0xa9   : > { %p5409_p3 = scmp.ne.s32.totalorder %s5394_s10, 0 }
  0xaa   : > { %s249_s0 = sand.u32 (!%p5409_p3), 1, %s4515_s22   ;;  %p5410_p4 = scmp.ne.s32.totalorder (!%p5409_p3), %s5388_s6, 0 }
  0xab   : > { %247 = sbr.rel (%p5409_p3) target bundleno = 1063 (0x427), region = 36  ;;  %s3233_s3 = sshll.u32 (!%p5409_p3), %s249_s0, 10 }
  0xac   : > { %s250_s24 = scalar_lea.sflag (!%p5409_p3), [#allocation4], %s249_s0  ;;  %s4885_s30 = scalar_lea.vmem (!%p5409_p3), [#allocation3], %s3233_s3 }
  0xb2   : > { %4466 = dma.done.wait (%p5410_p4), %s250_s24, 16384  }
  0xb3   : > { %4468 = vsyncadd (%p5410_p4), %s250_s24, 4294950912  ;;  %s258_s25 = sand.u32 1, %s4647_s29   ;;  %s260_s27 = sand.u32 1, %s4503_s19  }
  0xb4   : > { %s3234_s18 = sshll.u32 %s260_s27, 8  ;;  %s259_s10 = scalar_lea.sflag [#allocation7], %s258_s25 }
  0xb5   : > { %s4893_s8 = scalar_lea.vmem [#allocation6], %s3234_s18  ;;  %p5411_p7 = scmp.ne.s32.totalorder %s5389_s7, 0 }
  0xb7   : > { %4470 = dma.done.wait (%p5411_p7), %s259_s10, 4096  }
  0xb8   : > { %4472 = vsyncadd (%p5411_p7), %s259_s10, 4294963200  ;;  %p5412_p6 = scmp.eq.s32.totalorder %s4647_s29, 0 }
  0xba   : > { %4474 = dma.done.wait (%p5412_p6), [#allocation7], 16   ;;  %p5413_p1 = pmov %p5412_p6 }
  0xbc   : > { %4476 = vsyncadd (%p5413_p1), [#allocation7], 4294967280  ;;  %p5414_p2 = pmov %p5413_p1 }
  0xbd   : > { %p5415_p5 = pmov %p5413_p1 }
  0xbe   : > { %4478 = dma.done.wait (%p5414_p2), [#allocation10], 1024  }
  0xbf   : > { %4480 = vsyncadd (%p5415_p5), [#allocation10], 4294966272  ;;  %s5416_s6 = sld [smem:[#allocation18_spill]]  ;;  %s5417_s7 = sld [smem:[#allocation19_spill]] }
  0xc5   : > { %s297_s13 = sand.u32 1, %s5416_s6   ;;  %p3238_p11 = scmp.ne.s32.totalorder %s5417_s7, 0 }
  0xc6   : > { %s3237_s16 = sshll.u32 %s297_s13, 8  ;;  %v4550_v0 = vmov (!%p3238_p11), 0.0  }
  0xc7   : > { %s4910_s14 = scalar_lea.vmem [#allocation11], %s3237_s16  ;;  %308 = sbr.rel (%p3238_p11) target bundleno = 231 (0xe7), region = 56  ;;  %309 = vst [vmem:[#allocation2] sm:$0xff] (!%p3238_p11), %v4550_v0  ;;  %310 = vst [vmem:[#allocation2 + $0x8] sm:$0xff] (!%p3238_p11), %v4550_v0 }
  0xc8   : > { %311 = vst [vmem:[#allocation2 + $0x10] sm:$0xff] (!%p3238_p11), %v4550_v0  ;;  %312 = vst [vmem:[#allocation2 + $0x18] sm:$0xff] (!%p3238_p11), %v4550_v0 }
  0xc9   : > { %313 = vst [vmem:[#allocation2 + $0x20] sm:$0xff] (!%p3238_p11), %v4550_v0  ;;  %314 = vst [vmem:[#allocation2 + $0x28] sm:$0xff] (!%p3238_p11), %v4550_v0 }
  0xca   : > { %315 = vst [vmem:[#allocation2 + $0x30] sm:$0xff] (!%p3238_p11), %v4550_v0  ;;  %316 = vst [vmem:[#allocation2 + $0x38] sm:$0xff] (!%p3238_p11), %v4550_v0 }
  0xcb   : > { %317 = vst [vmem:[#allocation2 + $0x40] sm:$0xff] (!%p3238_p11), %v4550_v0  ;;  %318 = vst [vmem:[#allocation2 + $0x48] sm:$0xff] (!%p3238_p11), %v4550_v0 }
  0xcc   : > { %319 = vst [vmem:[#allocation2 + $0x50] sm:$0xff] (!%p3238_p11), %v4550_v0  ;;  %320 = vst [vmem:[#allocation2 + $0x58] sm:$0xff] (!%p3238_p11), %v4550_v0 }
  0xcd   : > { %321 = vst [vmem:[#allocation2 + $0x60] sm:$0xff] (!%p3238_p11), %v4550_v0  ;;  %322 = vst [vmem:[#allocation2 + $0x68] sm:$0xff] (!%p3238_p11), %v4550_v0 }
  0xce   : > { %323 = vst [vmem:[#allocation2 + $0x70] sm:$0xff] %v4550_v0  ;;  %324 = vst [vmem:[#allocation2 + $0x78] sm:$0xff] %v4550_v0 }
  0xcf   : > { %325 = vst [vmem:[#allocation2 + $0x80] sm:$0xff] %v4550_v0  ;;  %326 = vst [vmem:[#allocation2 + $0x88] sm:$0xff] %v4550_v0 }
  0xd0   : > { %327 = vst [vmem:[#allocation2 + $0x90] sm:$0xff] %v4550_v0  ;;  %328 = vst [vmem:[#allocation2 + $0x98] sm:$0xff] %v4550_v0 }
  0xd1   : > { %329 = vst [vmem:[#allocation2 + $0xa0] sm:$0xff] %v4550_v0  ;;  %330 = vst [vmem:[#allocation2 + $0xa8] sm:$0xff] %v4550_v0 }
  0xd2   : > { %331 = vst [vmem:[#allocation2 + $0xb0] sm:$0xff] %v4550_v0  ;;  %332 = vst [vmem:[#allocation2 + $0xb8] sm:$0xff] %v4550_v0 }
  0xd3   : > { %333 = vst [vmem:[#allocation2 + $0xc0] sm:$0xff] %v4550_v0  ;;  %334 = vst [vmem:[#allocation2 + $0xc8] sm:$0xff] %v4550_v0 }
  0xd4   : > { %335 = vst [vmem:[#allocation2 + $0xd0] sm:$0xff] %v4550_v0  ;;  %336 = vst [vmem:[#allocation2 + $0xd8] sm:$0xff] %v4550_v0 }
  0xd5   : > { %337 = vst [vmem:[#allocation2 + $0xe0] sm:$0xff] %v4550_v0  ;;  %338 = vst [vmem:[#allocation2 + $0xe8] sm:$0xff] %v4550_v0 }
  0xd6   : > { %339 = vst [vmem:[#allocation2 + $0xf0] sm:$0xff] %v4550_v0  ;;  %340 = vst [vmem:[#allocation2 + $0xf8] sm:$0xff] %v4550_v0 }
  0xd7   : > { %341 = vst [vmem:[#allocation2 + $0x100] sm:$0xff] %v4550_v0  ;;  %342 = vst [vmem:[#allocation2 + $0x108] sm:$0xff] %v4550_v0 }
  0xd8   : > { %343 = vst [vmem:[#allocation2 + $0x110] sm:$0xff] %v4550_v0  ;;  %344 = vst [vmem:[#allocation2 + $0x118] sm:$0xff] %v4550_v0 }
  0xd9   : > { %345 = vst [vmem:[#allocation2 + $0x120] sm:$0xff] %v4550_v0  ;;  %346 = vst [vmem:[#allocation2 + $0x128] sm:$0xff] %v4550_v0 }
  0xda   : > { %347 = vst [vmem:[#allocation2 + $0x130] sm:$0xff] %v4550_v0  ;;  %348 = vst [vmem:[#allocation2 + $0x138] sm:$0xff] %v4550_v0 }
  0xdb   : > { %349 = vst [vmem:[#allocation2 + $0x140] sm:$0xff] %v4550_v0  ;;  %350 = vst [vmem:[#allocation2 + $0x148] sm:$0xff] %v4550_v0 }
  0xdc   : > { %351 = vst [vmem:[#allocation2 + $0x150] sm:$0xff] %v4550_v0  ;;  %352 = vst [vmem:[#allocation2 + $0x158] sm:$0xff] %v4550_v0 }
  0xdd   : > { %353 = vst [vmem:[#allocation2 + $0x160] sm:$0xff] %v4550_v0  ;;  %354 = vst [vmem:[#allocation2 + $0x168] sm:$0xff] %v4550_v0 }
  0xde   : > { %355 = vst [vmem:[#allocation2 + $0x170] sm:$0xff] %v4550_v0  ;;  %356 = vst [vmem:[#allocation2 + $0x178] sm:$0xff] %v4550_v0 }
  0xdf   : > { %357 = vst [vmem:[#allocation2 + $0x180] sm:$0xff] %v4550_v0  ;;  %358 = vst [vmem:[#allocation2 + $0x188] sm:$0xff] %v4550_v0 }
  0xe0   : > { %359 = vst [vmem:[#allocation2 + $0x190] sm:$0xff] %v4550_v0  ;;  %360 = vst [vmem:[#allocation2 + $0x198] sm:$0xff] %v4550_v0 }
  0xe1   : > { %361 = vst [vmem:[#allocation2 + $0x1a0] sm:$0xff] %v4550_v0  ;;  %362 = vst [vmem:[#allocation2 + $0x1a8] sm:$0xff] %v4550_v0 }
  0xe2   : > { %363 = vst [vmem:[#allocation2 + $0x1b0] sm:$0xff] %v4550_v0  ;;  %364 = vst [vmem:[#allocation2 + $0x1b8] sm:$0xff] %v4550_v0 }
  0xe3   : > { %365 = vst [vmem:[#allocation2 + $0x1c0] sm:$0xff] %v4550_v0  ;;  %366 = vst [vmem:[#allocation2 + $0x1c8] sm:$0xff] %v4550_v0 }
  0xe4   : > { %367 = vst [vmem:[#allocation2 + $0x1d0] sm:$0xff] %v4550_v0  ;;  %368 = vst [vmem:[#allocation2 + $0x1d8] sm:$0xff] %v4550_v0 }
  0xe5   : > { %369 = vst [vmem:[#allocation2 + $0x1e0] sm:$0xff] %v4550_v0  ;;  %370 = vst [vmem:[#allocation2 + $0x1e8] sm:$0xff] %v4550_v0 }
  0xe6   : > { %371 = vst [vmem:[#allocation2 + $0x1f0] sm:$0xff] %v4550_v0  ;;  %372 = vst [vmem:[#allocation2 + $0x1f8] sm:$0xff] %v4550_v0 }
  0xe7 PF: > { %v4033_v1 = vld [vmem:[%s4893_s8] sm:$0xff]   ;;  %v4551_v2 = vmov 0   ;;  %v4035_v4 = vld [vmem:[%s4893_s8 + $0x8] sm:$0xff]   ;;  %v4037_v6 = vld [vmem:[%s4893_s8 + $0x10] sm:$0xff]   ;;  %s5418_s29 = sld [smem:[#allocation19_spill]] }
  0xe8   : > { %1461 = vmatprep.subr.bf16.mxu0 %v4551_v2  ;;  %1750 = vmatprep.subr.bf16.mxu1 %v4551_v2  ;;  %v4034_v3 = vld [vmem:[%s4893_s8 + $0x80] sm:$0xff]   ;;  %v4036_v5 = vld [vmem:[%s4893_s8 + $0x88] sm:$0xff]   ;;  %v4038_v7 = vld [vmem:[%s4893_s8 + $0x90] sm:$0xff]  }
  0xe9   : > { %1462 = vmatpush1.bf16.msra.mxu0 %v4033_v1  ;;  %1751 = vmatpush1.bf16.msra.mxu1 %v4034_v3  ;;  %v4039_v8 = vld [vmem:[%s4893_s8 + $0x18] sm:$0xff]   ;;  %v4041_v10 = vld [vmem:[%s4893_s8 + $0x20] sm:$0xff]   ;;  %v4043_v12 = vld [vmem:[%s4893_s8 + $0x28] sm:$0xff]  }
  0xea   : > { %1463 = vmatprep.subr.bf16.mxu0 %v4551_v2  ;;  %1752 = vmatprep.subr.bf16.mxu1 %v4551_v2  ;;  %v4040_v9 = vld [vmem:[%s4893_s8 + $0x98] sm:$0xff]   ;;  %v4042_v11 = vld [vmem:[%s4893_s8 + $0xa0] sm:$0xff]   ;;  %v4044_v13 = vld [vmem:[%s4893_s8 + $0xa8] sm:$0xff]  }
  0xeb   : > { %v4045_v14 = vld [vmem:[%s4893_s8 + $0x30] sm:$0xff]   ;;  %v4047_v16 = vld [vmem:[%s4893_s8 + $0x38] sm:$0xff]   ;;  %v4049_v18 = vld [vmem:[%s4893_s8 + $0x40] sm:$0xff]  }
  0xec   : > { %v4046_v15 = vld [vmem:[%s4893_s8 + $0xb0] sm:$0xff]   ;;  %v4048_v17 = vld [vmem:[%s4893_s8 + $0xb8] sm:$0xff]   ;;  %v4050_v19 = vld [vmem:[%s4893_s8 + $0xc0] sm:$0xff]  }
  0xed   : > { %1464 = vmatpush1.bf16.msra.mxu0 %v4035_v4  ;;  %1753 = vmatpush1.bf16.msra.mxu1 %v4036_v5  ;;  %v4067_v20 = vld [vmem:[%s4885_s30 + $0x4] ss:$16 sps:$4 sm:$0xff]   ;;  %v4051_v21 = vld [vmem:[%s4893_s8 + $0x48] sm:$0xff]   ;;  %v4055_v26 = vld [vmem:[%s4893_s8 + $0x58] sm:$0xff]   ;;  %p3399_p10 = scmp.ne.s32.totalorder %s5418_s29, 1 }
  0xee   : > { %1465 = vmatprep.subr.bf16.mxu0 %v4551_v2  ;;  %1754 = vmatprep.subr.bf16.mxu1 %v4551_v2  ;;  %v4070_v22 = vld [vmem:[%s4885_s30 + $0xc] ss:$16 sps:$4 sm:$0xff]   ;;  %v4053_v24 = vld [vmem:[%s4893_s8 + $0x50] sm:$0xff]   ;;  %v4057_v28 = vld [vmem:[%s4893_s8 + $0x60] sm:$0xff]  }
  0xef   : > { %v4052_v23 = vld [vmem:[%s4893_s8 + $0xc8] sm:$0xff]   ;;  %1493 = vmatprep.mubr.bf16.mxu0 %v4067_v20  ;;  %1782 = vmatprep.mubr.bf16.mxu1 %v4070_v22  ;;  %v4054_v25 = vld [vmem:[%s4893_s8 + $0xd0] sm:$0xff]   ;;  %v4056_v27 = vld [vmem:[%s4893_s8 + $0xd8] sm:$0xff]  }
  0xf0   : > { %v4058_v29 = vld [vmem:[%s4893_s8 + $0xe0] sm:$0xff]   ;;  %v4059_v30 = vld [vmem:[%s4893_s8 + $0x68] sm:$0xff]   ;;  %v4061_v32 = vld [vmem:[%s4893_s8 + $0x70] sm:$0xff]  }
  0xf1   : > { %1466 = vmatpush1.bf16.msra.mxu0 %v4037_v6  ;;  %1755 = vmatpush1.bf16.msra.mxu1 %v4038_v7  ;;  %v4060_v31 = vld [vmem:[%s4893_s8 + $0xe8] sm:$0xff]   ;;  %v4062_v33 = vld [vmem:[%s4893_s8 + $0xf0] sm:$0xff]   ;;  %v4063_v34 = vld [vmem:[%s4893_s8 + $0x78] sm:$0xff]  }
  0xf2   : > { %1467 = vmatprep.subr.bf16.mxu0 %v4551_v2  ;;  %1756 = vmatprep.subr.bf16.mxu1 %v4551_v2  ;;  %v4064_v35 = vld [vmem:[%s4893_s8 + $0xf8] sm:$0xff]   ;;  %v4065_v36 = vld [vmem:[%s4885_s30] ss:$16 sps:$4 sm:$0xff]   ;;  %v4071_v38 = vld [vmem:[%s4885_s30 + $0x24] ss:$16 sps:$4 sm:$0xff]  }
  0xf3   : > { %v4068_v37 = vld [vmem:[%s4885_s30 + $0x8] ss:$16 sps:$4 sm:$0xff]   ;;  %v4073_v39 = vld [vmem:[%s4885_s30 + $0x2c] ss:$16 sps:$4 sm:$0xff]   ;;  %v4075_v40 = vld [vmem:[%s4885_s30 + $0x20] ss:$16 sps:$4 sm:$0xff]  }
  0xf4   : > { %v4076_v41 = vld [vmem:[%s4885_s30 + $0x28] ss:$16 sps:$4 sm:$0xff]   ;;  %v4077_v42 = vld [vmem:[%s4885_s30 + $0x44] ss:$16 sps:$4 sm:$0xff]   ;;  %v4079_v43 = vld [vmem:[%s4885_s30 + $0x4c] ss:$16 sps:$4 sm:$0xff]  }
  0xf5   : > { %1468 = vmatpush1.bf16.msra.mxu0 %v4039_v8  ;;  %1757 = vmatpush1.bf16.msra.mxu1 %v4040_v9  ;;  %v4081_v44 = vld [vmem:[%s4885_s30 + $0x40] ss:$16 sps:$4 sm:$0xff]   ;;  %v4082_v45 = vld [vmem:[%s4885_s30 + $0x48] ss:$16 sps:$4 sm:$0xff]   ;;  %v4083_v46 = vld [vmem:[%s4885_s30 + $0x64] ss:$16 sps:$4 sm:$0xff]  }
  0xf6   : > { %1469 = vmatprep.subr.bf16.mxu0 %v4551_v2  ;;  %1758 = vmatprep.subr.bf16.mxu1 %v4551_v2  ;;  %v4085_v47 = vld [vmem:[%s4885_s30 + $0x6c] ss:$16 sps:$4 sm:$0xff]   ;;  %v4087_v48 = vld [vmem:[%s4885_s30 + $0x60] ss:$16 sps:$4 sm:$0xff]   ;;  %v4088_v49 = vld [vmem:[%s4885_s30 + $0x68] ss:$16 sps:$4 sm:$0xff]  }
  0xf7   : > { %v4089_v50 = vld [vmem:[%s4885_s30 + $0x84] ss:$16 sps:$4 sm:$0xff]   ;;  %v4091_v51 = vld [vmem:[%s4885_s30 + $0x8c] ss:$16 sps:$4 sm:$0xff]   ;;  %v4093_v52 = vld [vmem:[%s4885_s30 + $0x80] ss:$16 sps:$4 sm:$0xff]  }
  0xf8   : > { %v4094_v53 = vld [vmem:[%s4885_s30 + $0x88] ss:$16 sps:$4 sm:$0xff]   ;;  %v4095_v54 = vld [vmem:[%s4885_s30 + $0xa4] ss:$16 sps:$4 sm:$0xff]   ;;  %v4097_v55 = vld [vmem:[%s4885_s30 + $0xac] ss:$16 sps:$4 sm:$0xff]  }
  0xf9   : > { %1470 = vmatpush1.bf16.msra.mxu0 %v4041_v10  ;;  %1759 = vmatpush1.bf16.msra.mxu1 %v4042_v11  ;;  %v4099_v56 = vld [vmem:[%s4885_s30 + $0xa0] ss:$16 sps:$4 sm:$0xff]   ;;  %v4100_v57 = vld [vmem:[%s4885_s30 + $0xa8] ss:$16 sps:$4 sm:$0xff]   ;;  %v4101_v58 = vld [vmem:[%s4885_s30 + $0xc4] ss:$16 sps:$4 sm:$0xff]  }
  0xfa   : > { %1471 = vmatprep.subr.bf16.mxu0 %v4551_v2  ;;  %1760 = vmatprep.subr.bf16.mxu1 %v4551_v2  ;;  %v4103_v59 = vld [vmem:[%s4885_s30 + $0xcc] ss:$16 sps:$4 sm:$0xff]   ;;  %v4105_v60 = vld [vmem:[%s4885_s30 + $0xc0] ss:$16 sps:$4 sm:$0xff]   ;;  %v4106_v61 = vld [vmem:[%s4885_s30 + $0xc8] ss:$16 sps:$4 sm:$0xff]  }
  0xfb   : > { %v4107_v62 = vld [vmem:[%s4885_s30 + $0xe4] ss:$16 sps:$4 sm:$0xff]   ;;  %v4109_v63 = vld [vmem:[%s4885_s30 + $0xec] ss:$16 sps:$4 sm:$0xff]   ;;  %v4111_v0 = vld [vmem:[%s4885_s30 + $0xe0] ss:$16 sps:$4 sm:$0xff]  }
  0xfc   : > { %v4112_v1 = vld [vmem:[%s4885_s30 + $0xe8] ss:$16 sps:$4 sm:$0xff]   ;;  %v4115_v3 = vld [vmem:[%s4885_s30 + $0x10c] ss:$16 sps:$4 sm:$0xff]   ;;  %v4117_v4 = vld [vmem:[%s4885_s30 + $0x100] ss:$16 sps:$4 sm:$0xff]  }
  0xfd   : > { %1472 = vmatpush1.bf16.msra.mxu0 %v4043_v12  ;;  %1761 = vmatpush1.bf16.msra.mxu1 %v4044_v13  ;;  %v4118_v5 = vld [vmem:[%s4885_s30 + $0x108] ss:$16 sps:$4 sm:$0xff]   ;;  %v4119_v6 = vld [vmem:[%s4885_s30 + $0x124] ss:$16 sps:$4 sm:$0xff]   ;;  %v4121_v7 = vld [vmem:[%s4885_s30 + $0x12c] ss:$16 sps:$4 sm:$0xff]  }
  0xfe   : > { %1473 = vmatprep.subr.bf16.mxu0 %v4551_v2  ;;  %1762 = vmatprep.subr.bf16.mxu1 %v4551_v2  ;;  %v4123_v8 = vld [vmem:[%s4885_s30 + $0x120] ss:$16 sps:$4 sm:$0xff]   ;;  %v4124_v9 = vld [vmem:[%s4885_s30 + $0x128] ss:$16 sps:$4 sm:$0xff]   ;;  %v4125_v10 = vld [vmem:[%s4885_s30 + $0x144] ss:$16 sps:$4 sm:$0xff]  }
  0xff   : > { %v4127_v11 = vld [vmem:[%s4885_s30 + $0x14c] ss:$16 sps:$4 sm:$0xff]   ;;  %v4129_v12 = vld [vmem:[%s4885_s30 + $0x140] ss:$16 sps:$4 sm:$0xff]   ;;  %v4130_v13 = vld [vmem:[%s4885_s30 + $0x148] ss:$16 sps:$4 sm:$0xff]  }
 0x100   : > { %v4141_v20 = vld [vmem:[%s4885_s30 + $0x180] ss:$16 sps:$4 sm:$0xff]   ;;  %v4143_v22 = vld [vmem:[%s4885_s30 + $0x1a4] ss:$16 sps:$4 sm:$0xff]  }
 0x101   : > { %1474 = vmatpush1.bf16.msra.mxu0 %v4045_v14  ;;  %1763 = vmatpush1.bf16.msra.mxu1 %v4046_v15  ;;  %v4131_v14 = vld [vmem:[%s4885_s30 + $0x164] ss:$16 sps:$4 sm:$0xff]   ;;  %v4133_v15 = vld [vmem:[%s4885_s30 + $0x16c] ss:$16 sps:$4 sm:$0xff]  }
 0x102   : > { %1475 = vmatprep.subr.bf16.mxu0 %v4551_v2  ;;  %1764 = vmatprep.subr.bf16.mxu1 %v4551_v2 }
 0x105   : > { %1476 = vmatpush1.bf16.msra.mxu0 %v4047_v16  ;;  %1765 = vmatpush1.bf16.msra.mxu1 %v4048_v17  ;;  %v4135_v16 = vld [vmem:[%s4885_s30 + $0x160] ss:$16 sps:$4 sm:$0xff]   ;;  %v4136_v17 = vld [vmem:[%s4885_s30 + $0x168] ss:$16 sps:$4 sm:$0xff]  }
 0x106   : > { %1477 = vmatprep.subr.bf16.mxu0 %v4551_v2  ;;  %1766 = vmatprep.subr.bf16.mxu1 %v4551_v2 }
 0x109   : > { %1478 = vmatpush1.bf16.msra.mxu0 %v4049_v18  ;;  %1767 = vmatpush1.bf16.msra.mxu1 %v4050_v19  ;;  %v4137_v18 = vld [vmem:[%s4885_s30 + $0x184] ss:$16 sps:$4 sm:$0xff]   ;;  %v4139_v19 = vld [vmem:[%s4885_s30 + $0x18c] ss:$16 sps:$4 sm:$0xff]  }
 0x10a   : > { %1479 = vmatprep.subr.bf16.mxu0 %v4551_v2  ;;  %1768 = vmatprep.subr.bf16.mxu1 %v4551_v2 }
 0x10d   : > { %1480 = vmatpush1.bf16.msra.mxu0 %v4051_v21  ;;  %1769 = vmatpush1.bf16.msra.mxu1 %v4052_v23  ;;  %v4142_v21 = vld [vmem:[%s4885_s30 + $0x188] ss:$16 sps:$4 sm:$0xff]   ;;  %v4145_v23 = vld [vmem:[%s4885_s30 + $0x1ac] ss:$16 sps:$4 sm:$0xff]  }
 0x10e   : > { %1481 = vmatprep.subr.bf16.mxu0 %v4551_v2  ;;  %1770 = vmatprep.subr.bf16.mxu1 %v4551_v2 }
 0x111   : > { %1482 = vmatpush1.bf16.msra.mxu0 %v4053_v24  ;;  %1771 = vmatpush1.bf16.msra.mxu1 %v4054_v25  ;;  %v4147_v24 = vld [vmem:[%s4885_s30 + $0x1a0] ss:$16 sps:$4 sm:$0xff]   ;;  %v4148_v25 = vld [vmem:[%s4885_s30 + $0x1a8] ss:$16 sps:$4 sm:$0xff]  }
 0x112   : > { %1483 = vmatprep.subr.bf16.mxu0 %v4551_v2  ;;  %1772 = vmatprep.subr.bf16.mxu1 %v4551_v2 }
 0x115   : > { %1484 = vmatpush1.bf16.msra.mxu0 %v4055_v26  ;;  %1773 = vmatpush1.bf16.msra.mxu1 %v4056_v27  ;;  %v4149_v26 = vld [vmem:[%s4885_s30 + $0x1c4] ss:$16 sps:$4 sm:$0xff]   ;;  %v4151_v27 = vld [vmem:[%s4885_s30 + $0x1cc] ss:$16 sps:$4 sm:$0xff]  }
 0x116   : > { %1485 = vmatprep.subr.bf16.mxu0 %v4551_v2  ;;  %1774 = vmatprep.subr.bf16.mxu1 %v4551_v2 }
 0x119   : > { %1486 = vmatpush1.bf16.msra.mxu0 %v4057_v28  ;;  %1775 = vmatpush1.bf16.msra.mxu1 %v4058_v29  ;;  %v4153_v28 = vld [vmem:[%s4885_s30 + $0x1c0] ss:$16 sps:$4 sm:$0xff]   ;;  %v4154_v29 = vld [vmem:[%s4885_s30 + $0x1c8] ss:$16 sps:$4 sm:$0xff]  }
 0x11a   : > { %1487 = vmatprep.subr.bf16.mxu0 %v4551_v2  ;;  %1776 = vmatprep.subr.bf16.mxu1 %v4551_v2 }
 0x11d   : > { %1488 = vmatpush1.bf16.msra.mxu0 %v4059_v30  ;;  %1777 = vmatpush1.bf16.msra.mxu1 %v4060_v31  ;;  %v4155_v30 = vld [vmem:[%s4885_s30 + $0x1e4] ss:$16 sps:$4 sm:$0xff]   ;;  %v4157_v31 = vld [vmem:[%s4885_s30 + $0x1ec] ss:$16 sps:$4 sm:$0xff]  }
 0x11e   : > { %1489 = vmatprep.subr.bf16.mxu0 %v4551_v2  ;;  %1778 = vmatprep.subr.bf16.mxu1 %v4551_v2 }
 0x121   : > { %1490 = vmatpush1.bf16.msra.mxu0 %v4061_v32  ;;  %1779 = vmatpush1.bf16.msra.mxu1 %v4062_v33  ;;  %v4159_v32 = vld [vmem:[%s4885_s30 + $0x1e0] ss:$16 sps:$4 sm:$0xff]   ;;  %v4160_v33 = vld [vmem:[%s4885_s30 + $0x1e8] ss:$16 sps:$4 sm:$0xff]  }
 0x122   : > { %1491 = vmatprep.subr.bf16.mxu0 %v4551_v2  ;;  %1780 = vmatprep.subr.bf16.mxu1 %v4551_v2  ;;  %v4113_v2 = vld [vmem:[%s4885_s30 + $0x104] ss:$16 sps:$4 sm:$0xff]  }
 0x125   : > { %1492 = vmatpush1.bf16.msra.mxu0 %v4063_v34  ;;  %1781 = vmatpush1.bf16.msra.mxu1 %v4064_v35  ;;  %v4161_v34 = vld [vmem:[%s4885_s30 + $0x204] ss:$16 sps:$4 sm:$0xff]   ;;  %v4163_v35 = vld [vmem:[%s4885_s30 + $0x20c] ss:$16 sps:$4 sm:$0xff]  }
 0x128   : > { %1494 = vmatmul.mubr.bf16.vlgmr.msra.gmra.mrb[0].mxu0 %v4065_v36  ;;  %1783 = vmatmul.mubr.bf16.vlgmr.msra.gmra.mrb[0].mxu1 %v4068_v37  ;;  %v4165_v36 = vld [vmem:[%s4885_s30 + $0x200] ss:$16 sps:$4 sm:$0xff]   ;;  %v4166_v37 = vld [vmem:[%s4885_s30 + $0x208] ss:$16 sps:$4 sm:$0xff]  }
 0x129   : > { %1501 = vmatprep.mubr.bf16.mxu0 %v4071_v38  ;;  %1790 = vmatprep.mubr.bf16.mxu1 %v4073_v39  ;;  %v4167_v38 = vld [vmem:[%s4885_s30 + $0x224] ss:$16 sps:$4 sm:$0xff]   ;;  %v4169_v39 = vld [vmem:[%s4885_s30 + $0x22c] ss:$16 sps:$4 sm:$0xff]  }
 0x130   : > { %1502 = vmatmul.mubr.bf16.gmra.mrb[4].mxu0 %v4075_v40  ;;  %1791 = vmatmul.mubr.bf16.gmra.mrb[4].mxu1 %v4076_v41  ;;  %v4171_v40 = vld [vmem:[%s4885_s30 + $0x220] ss:$16 sps:$4 sm:$0xff]   ;;  %v4172_v41 = vld [vmem:[%s4885_s30 + $0x228] ss:$16 sps:$4 sm:$0xff]  }
 0x131   : > { %1509 = vmatprep.mubr.bf16.mxu0 %v4077_v42  ;;  %1798 = vmatprep.mubr.bf16.mxu1 %v4079_v43  ;;  %v4173_v42 = vld [vmem:[%s4885_s30 + $0x244] ss:$16 sps:$4 sm:$0xff]   ;;  %v4175_v43 = vld [vmem:[%s4885_s30 + $0x24c] ss:$16 sps:$4 sm:$0xff]  }
 0x138   : > { %1510 = vmatmul.mubr.bf16.gmra.mrb[8].mxu0 %v4081_v44  ;;  %1799 = vmatmul.mubr.bf16.gmra.mrb[8].mxu1 %v4082_v45  ;;  %v4177_v44 = vld [vmem:[%s4885_s30 + $0x240] ss:$16 sps:$4 sm:$0xff]   ;;  %v4178_v45 = vld [vmem:[%s4885_s30 + $0x248] ss:$16 sps:$4 sm:$0xff]  }
 0x139   : > { %1517 = vmatprep.mubr.bf16.mxu0 %v4083_v46  ;;  %1806 = vmatprep.mubr.bf16.mxu1 %v4085_v47  ;;  %v4179_v46 = vld [vmem:[%s4885_s30 + $0x264] ss:$16 sps:$4 sm:$0xff]   ;;  %v4181_v47 = vld [vmem:[%s4885_s30 + $0x26c] ss:$16 sps:$4 sm:$0xff]  }
 0x140   : > { %1518 = vmatmul.mubr.bf16.gmra.mrb[12].mxu0 %v4087_v48  ;;  %1807 = vmatmul.mubr.bf16.gmra.mrb[12].mxu1 %v4088_v49  ;;  %v4183_v48 = vld [vmem:[%s4885_s30 + $0x260] ss:$16 sps:$4 sm:$0xff]   ;;  %v4184_v49 = vld [vmem:[%s4885_s30 + $0x268] ss:$16 sps:$4 sm:$0xff]  }
 0x141   : > { %1525 = vmatprep.mubr.bf16.mxu0 %v4089_v50  ;;  %1814 = vmatprep.mubr.bf16.mxu1 %v4091_v51  ;;  %v4185_v50 = vld [vmem:[%s4885_s30 + $0x284] ss:$16 sps:$4 sm:$0xff]   ;;  %v4187_v51 = vld [vmem:[%s4885_s30 + $0x28c] ss:$16 sps:$4 sm:$0xff]  }
 0x148   : > { %1526 = vmatmul.mubr.bf16.gmra.mrb[16].mxu0 %v4093_v52  ;;  %1815 = vmatmul.mubr.bf16.gmra.mrb[16].mxu1 %v4094_v53  ;;  %v4189_v52 = vld [vmem:[%s4885_s30 + $0x280] ss:$16 sps:$4 sm:$0xff]   ;;  %v4190_v53 = vld [vmem:[%s4885_s30 + $0x288] ss:$16 sps:$4 sm:$0xff]  }
 0x149   : > { %1533 = vmatprep.mubr.bf16.mxu0 %v4095_v54  ;;  %1822 = vmatprep.mubr.bf16.mxu1 %v4097_v55  ;;  %v4191_v54 = vld [vmem:[%s4885_s30 + $0x2a4] ss:$16 sps:$4 sm:$0xff]   ;;  %v4193_v55 = vld [vmem:[%s4885_s30 + $0x2ac] ss:$16 sps:$4 sm:$0xff]  }
 0x150   : > { %1534 = vmatmul.mubr.bf16.gmra.mrb[20].mxu0 %v4099_v56  ;;  %1823 = vmatmul.mubr.bf16.gmra.mrb[20].mxu1 %v4100_v57  ;;  %v4195_v56 = vld [vmem:[%s4885_s30 + $0x2a0] ss:$16 sps:$4 sm:$0xff]   ;;  %v4196_v57 = vld [vmem:[%s4885_s30 + $0x2a8] ss:$16 sps:$4 sm:$0xff]  }
 0x151   : > { %1541 = vmatprep.mubr.bf16.mxu0 %v4101_v58  ;;  %1830 = vmatprep.mubr.bf16.mxu1 %v4103_v59  ;;  %v4197_v58 = vld [vmem:[%s4885_s30 + $0x2c4] ss:$16 sps:$4 sm:$0xff]   ;;  %v4199_v59 = vld [vmem:[%s4885_s30 + $0x2cc] ss:$16 sps:$4 sm:$0xff]  }
 0x158   : > { %1542 = vmatmul.mubr.bf16.gmra.mrb[24].mxu0 %v4105_v60  ;;  %1831 = vmatmul.mubr.bf16.gmra.mrb[24].mxu1 %v4106_v61  ;;  %v4201_v60 = vld [vmem:[%s4885_s30 + $0x2c0] ss:$16 sps:$4 sm:$0xff]   ;;  %v4202_v61 = vld [vmem:[%s4885_s30 + $0x2c8] ss:$16 sps:$4 sm:$0xff]  }
 0x159   : > { %1549 = vmatprep.mubr.bf16.mxu0 %v4107_v62  ;;  %1838 = vmatprep.mubr.bf16.mxu1 %v4109_v63  ;;  %v4203_v62 = vld [vmem:[%s4885_s30 + $0x2e4] ss:$16 sps:$4 sm:$0xff]   ;;  %v4205_v63 = vld [vmem:[%s4885_s30 + $0x2ec] ss:$16 sps:$4 sm:$0xff]  }
 0x160   : > { %1550 = vmatmul.mubr.bf16.gmra.mrb[28].mxu0 %v4111_v0  ;;  %1839 = vmatmul.mubr.bf16.gmra.mrb[28].mxu1 %v4112_v1  ;;  %v4207_v0 = vld [vmem:[%s4885_s30 + $0x2e0] ss:$16 sps:$4 sm:$0xff]   ;;  %v4208_v1 = vld [vmem:[%s4885_s30 + $0x2e8] ss:$16 sps:$4 sm:$0xff]  }
 0x161   : > { %1557 = vmatprep.mubr.bf16.mxu0 %v4113_v2  ;;  %1846 = vmatprep.mubr.bf16.mxu1 %v4115_v3  ;;  %v4209_v2 = vld [vmem:[%s4885_s30 + $0x304] ss:$16 sps:$4 sm:$0xff]   ;;  %v4211_v3 = vld [vmem:[%s4885_s30 + $0x30c] ss:$16 sps:$4 sm:$0xff]  }
 0x168   : > { %1558 = vmatmul.mubr.bf16.gmra.mrb[32].mxu0 %v4117_v4  ;;  %1847 = vmatmul.mubr.bf16.gmra.mrb[32].mxu1 %v4118_v5  ;;  %v4213_v4 = vld [vmem:[%s4885_s30 + $0x300] ss:$16 sps:$4 sm:$0xff]   ;;  %v4214_v5 = vld [vmem:[%s4885_s30 + $0x308] ss:$16 sps:$4 sm:$0xff]  }
 0x169   : > { %1565 = vmatprep.mubr.bf16.mxu0 %v4119_v6  ;;  %1854 = vmatprep.mubr.bf16.mxu1 %v4121_v7  ;;  %v4215_v6 = vld [vmem:[%s4885_s30 + $0x324] ss:$16 sps:$4 sm:$0xff]   ;;  %v4217_v7 = vld [vmem:[%s4885_s30 + $0x32c] ss:$16 sps:$4 sm:$0xff]  }
 0x170   : > { %1566 = vmatmul.mubr.bf16.gmra.mrb[36].mxu0 %v4123_v8  ;;  %1855 = vmatmul.mubr.bf16.gmra.mrb[36].mxu1 %v4124_v9  ;;  %v4219_v8 = vld [vmem:[%s4885_s30 + $0x320] ss:$16 sps:$4 sm:$0xff]   ;;  %v4220_v9 = vld [vmem:[%s4885_s30 + $0x328] ss:$16 sps:$4 sm:$0xff]  }
 0x171   : > { %1573 = vmatprep.mubr.bf16.mxu0 %v4125_v10  ;;  %1862 = vmatprep.mubr.bf16.mxu1 %v4127_v11  ;;  %v4221_v10 = vld [vmem:[%s4885_s30 + $0x344] ss:$16 sps:$4 sm:$0xff]   ;;  %v4223_v11 = vld [vmem:[%s4885_s30 + $0x34c] ss:$16 sps:$4 sm:$0xff]  }
 0x178   : > { %1574 = vmatmul.mubr.bf16.gmra.mrb[40].mxu0 %v4129_v12  ;;  %1863 = vmatmul.mubr.bf16.gmra.mrb[40].mxu1 %v4130_v13  ;;  %v4225_v12 = vld [vmem:[%s4885_s30 + $0x340] ss:$16 sps:$4 sm:$0xff]   ;;  %v4226_v13 = vld [vmem:[%s4885_s30 + $0x348] ss:$16 sps:$4 sm:$0xff]  }
 0x179   : > { %1581 = vmatprep.mubr.bf16.mxu0 %v4131_v14  ;;  %1870 = vmatprep.mubr.bf16.mxu1 %v4133_v15  ;;  %v4227_v14 = vld [vmem:[%s4885_s30 + $0x364] ss:$16 sps:$4 sm:$0xff]   ;;  %v4229_v15 = vld [vmem:[%s4885_s30 + $0x36c] ss:$16 sps:$4 sm:$0xff]  }
 0x180   : > { %1582 = vmatmul.mubr.bf16.gmra.mrb[44].mxu0 %v4135_v16  ;;  %1871 = vmatmul.mubr.bf16.gmra.mrb[44].mxu1 %v4136_v17  ;;  %v373_v17 = vld [vmem:[#allocation2] sm:$0xff] }
 0x181   : > { %1589 = vmatprep.mubr.bf16.mxu0 %v4137_v18  ;;  %1878 = vmatprep.mubr.bf16.mxu1 %v4139_v19 }
 0x188   : > { %1590 = vmatmul.mubr.bf16.gmra.mrb[48].mxu0 %v4141_v20  ;;  %1879 = vmatmul.mubr.bf16.gmra.mrb[48].mxu1 %v4142_v21  ;;  %v4231_v20 = vld [vmem:[%s4885_s30 + $0x360] ss:$16 sps:$4 sm:$0xff]  }
 0x189   : > { %1597 = vmatprep.mubr.bf16.mxu0 %v4143_v22  ;;  %1886 = vmatprep.mubr.bf16.mxu1 %v4145_v23 }
 0x190   : > { %1598 = vmatmul.mubr.bf16.gmra.mrb[52].mxu0 %v4147_v24  ;;  %1887 = vmatmul.mubr.bf16.gmra.mrb[52].mxu1 %v4148_v25  ;;  %v4232_v24 = vld [vmem:[%s4885_s30 + $0x368] ss:$16 sps:$4 sm:$0xff]   ;;  %v4233_v25 = vld [vmem:[%s4885_s30 + $0x384] ss:$16 sps:$4 sm:$0xff]  }
 0x191   : > { %1605 = vmatprep.mubr.bf16.mxu0 %v4149_v26  ;;  %1894 = vmatprep.mubr.bf16.mxu1 %v4151_v27  ;;  %v374_v26 = vld [vmem:[#allocation2 + $0x8] sm:$0xff] }
 0x198   : > { %1606 = vmatmul.mubr.bf16.gmra.mrb[56].mxu0 %v4153_v28  ;;  %1895 = vmatmul.mubr.bf16.gmra.mrb[56].mxu1 %v4154_v29  ;;  %v4235_v29 = vld [vmem:[%s4885_s30 + $0x38c] ss:$16 sps:$4 sm:$0xff]  }
 0x199   : > { %1613 = vmatprep.mubr.bf16.mxu0 %v4155_v30  ;;  %1902 = vmatprep.mubr.bf16.mxu1 %v4157_v31 }
 0x1a0   : > { %1614 = vmatmul.mubr.bf16.gmra.mrb[60].mxu0 %v4159_v32  ;;  %1903 = vmatmul.mubr.bf16.gmra.mrb[60].mxu1 %v4160_v33 }
 0x1a1   : > { %1621 = vmatprep.mubr.bf16.mxu0 %v4161_v34  ;;  %1910 = vmatprep.mubr.bf16.mxu1 %v4163_v35  ;;  %v375_v35 = vld [vmem:[#allocation2 + $0x10] sm:$0xff] }
 0x1a8   : > { %1622 = vmatmul.mubr.bf16.gmra.mrb[64].mxu0 %v4165_v36  ;;  %1911 = vmatmul.mubr.bf16.gmra.mrb[64].mxu1 %v4166_v37 }
 0x1a9   : > { %1629 = vmatprep.mubr.bf16.mxu0 %v4167_v38  ;;  %1918 = vmatprep.mubr.bf16.mxu1 %v4169_v39  ;;  %v4237_v38 = vld [vmem:[%s4885_s30 + $0x380] ss:$16 sps:$4 sm:$0xff]  }
 0x1b0   : > { %1630 = vmatmul.mubr.bf16.gmra.mrb[68].mxu0 %v4171_v40  ;;  %1919 = vmatmul.mubr.bf16.gmra.mrb[68].mxu1 %v4172_v41 }
 0x1b1   : > { %1637 = vmatprep.mubr.bf16.mxu0 %v4173_v42  ;;  %1926 = vmatprep.mubr.bf16.mxu1 %v4175_v43  ;;  %v4238_v42 = vld [vmem:[%s4885_s30 + $0x388] ss:$16 sps:$4 sm:$0xff]   ;;  %v4239_v43 = vld [vmem:[%s4885_s30 + $0x3a4] ss:$16 sps:$4 sm:$0xff]  }
 0x1b8   : > { %1638 = vmatmul.mubr.bf16.gmra.mrb[72].mxu0 %v4177_v44  ;;  %1927 = vmatmul.mubr.bf16.gmra.mrb[72].mxu1 %v4178_v45  ;;  %v376_v44 = vld [vmem:[#allocation2 + $0x18] sm:$0xff] }
 0x1b9   : > { %1645 = vmatprep.mubr.bf16.mxu0 %v4179_v46  ;;  %1934 = vmatprep.mubr.bf16.mxu1 %v4181_v47  ;;  %v4241_v47 = vld [vmem:[%s4885_s30 + $0x3ac] ss:$16 sps:$4 sm:$0xff]  }
 0x1c0   : > { %1646 = vmatmul.mubr.bf16.gmra.mrb[76].mxu0 %v4183_v48  ;;  %1935 = vmatmul.mubr.bf16.gmra.mrb[76].mxu1 %v4184_v49 }
 0x1c1   : > { %1653 = vmatprep.mubr.bf16.mxu0 %v4185_v50  ;;  %1942 = vmatprep.mubr.bf16.mxu1 %v4187_v51 }
 0x1c8   : > { %1654 = vmatmul.mubr.bf16.gmra.mrb[80].mxu0 %v4189_v52  ;;  %1943 = vmatmul.mubr.bf16.gmra.mrb[80].mxu1 %v4190_v53  ;;  %v377_v53 = vld [vmem:[#allocation2 + $0x20] sm:$0xff] }
 0x1c9   : > { %1661 = vmatprep.mubr.bf16.mxu0 %v4191_v54  ;;  %1950 = vmatprep.mubr.bf16.mxu1 %v4193_v55 }
 0x1d0   : > { %1662 = vmatmul.mubr.bf16.gmra.mrb[84].mxu0 %v4195_v56  ;;  %1951 = vmatmul.mubr.bf16.gmra.mrb[84].mxu1 %v4196_v57  ;;  %v4243_v56 = vld [vmem:[%s4885_s30 + $0x3a0] ss:$16 sps:$4 sm:$0xff]  }
 0x1d1   : > { %1669 = vmatprep.mubr.bf16.mxu0 %v4197_v58  ;;  %1958 = vmatprep.mubr.bf16.mxu1 %v4199_v59 }
 0x1d8   : > { %1670 = vmatmul.mubr.bf16.gmra.mrb[88].mxu0 %v4201_v60  ;;  %1959 = vmatmul.mubr.bf16.gmra.mrb[88].mxu1 %v4202_v61  ;;  %v4244_v60 = vld [vmem:[%s4885_s30 + $0x3a8] ss:$16 sps:$4 sm:$0xff]   ;;  %v4245_v61 = vld [vmem:[%s4885_s30 + $0x3c4] ss:$16 sps:$4 sm:$0xff]  }
 0x1d9   : > { %1677 = vmatprep.mubr.bf16.mxu0 %v4203_v62  ;;  %1966 = vmatprep.mubr.bf16.mxu1 %v4205_v63  ;;  %v378_v62 = vld [vmem:[#allocation2 + $0x28] sm:$0xff] }
 0x1e0   : > { %1678 = vmatmul.mubr.bf16.gmra.mrb[92].mxu0 %v4207_v0  ;;  %1967 = vmatmul.mubr.bf16.gmra.mrb[92].mxu1 %v4208_v1  ;;  %v4247_v1 = vld [vmem:[%s4885_s30 + $0x3cc] ss:$16 sps:$4 sm:$0xff]  }
 0x1e1   : > { %1685 = vmatprep.mubr.bf16.mxu0 %v4209_v2  ;;  %1974 = vmatprep.mubr.bf16.mxu1 %v4211_v3 }
 0x1e8   : > { %1686 = vmatmul.mubr.bf16.gmra.mrb[96].mxu0 %v4213_v4  ;;  %1975 = vmatmul.mubr.bf16.gmra.mrb[96].mxu1 %v4214_v5 }
 0x1e9   : > { %1693 = vmatprep.mubr.bf16.mxu0 %v4215_v6  ;;  %1982 = vmatprep.mubr.bf16.mxu1 %v4217_v7  ;;  %v379_v7 = vld [vmem:[#allocation2 + $0x30] sm:$0xff] }
 0x1f0   : > { %1694 = vmatmul.mubr.bf16.gmra.mrb[100].mxu0 %v4219_v8  ;;  %1983 = vmatmul.mubr.bf16.gmra.mrb[100].mxu1 %v4220_v9 }
 0x1f1   : > { %1701 = vmatprep.mubr.bf16.mxu0 %v4221_v10  ;;  %1990 = vmatprep.mubr.bf16.mxu1 %v4223_v11  ;;  %v4249_v10 = vld [vmem:[%s4885_s30 + $0x3c0] ss:$16 sps:$4 sm:$0xff]  }
 0x1f8   : > { %1702 = vmatmul.mubr.bf16.gmra.mrb[104].mxu0 %v4225_v12  ;;  %1991 = vmatmul.mubr.bf16.gmra.mrb[104].mxu1 %v4226_v13 }
 0x1f9   : > { %1709 = vmatprep.mubr.bf16.mxu0 %v4227_v14  ;;  %1998 = vmatprep.mubr.bf16.mxu1 %v4229_v15  ;;  %v4250_v14 = vld [vmem:[%s4885_s30 + $0x3c8] ss:$16 sps:$4 sm:$0xff]   ;;  %v4251_v15 = vld [vmem:[%s4885_s30 + $0x3e4] ss:$16 sps:$4 sm:$0xff]  }
 0x1fb   : > { %v1495_v16 = vpop.f32.mrb[0].mxu0  ;;  %v1784_v18 = vpop.f32.mrb[0].mxu1 }
 0x1fc   : > { %v1497_v19 = vpop.f32.mrb[1].mxu0  ;;  %v1785_v21 = vadd.f32 %v1784_v18, %v1495_v16  ;;  %v1786_v22 = vpop.f32.mrb[1].mxu1  ;;  %v380_v16 = vld [vmem:[#allocation2 + $0x38] sm:$0xff] }
 0x1fd   : > { %v1498_v23 = vpop.f32.mrb[2].mxu0  ;;  %v1787_v27 = vpop.f32.mrb[2].mxu1  ;;  %v4253_v19 = vld [vmem:[%s4885_s30 + $0x3ec] ss:$16 sps:$4 sm:$0xff]  }
 0x1fe   : > { %v1500_v28 = vpop.f32.mrb[3].mxu0  ;;  %v2039_v30 = vadd.f32 %v1785_v21, %v373_v17  ;;  %v1788_v31 = vadd.f32 %v1787_v27, %v1498_v23  ;;  %v1789_v32 = vpop.f32.mrb[3].mxu1 }
 0x1ff   : > { %v4255_v28 = vld [vmem:[%s4885_s30 + $0x3e0] ss:$16 sps:$4 sm:$0xff]   ;;  %v4256_v32 = vld [vmem:[%s4885_s30 + $0x3e8] ss:$16 sps:$4 sm:$0xff]  }
 0x200   : > { %1710 = vmatmul.mubr.bf16.gmra.mrb[108].mxu0 %v4231_v20  ;;  %2103 = vst [vmem:[#allocation2] sm:$0xff] %v2039_v30  ;;  %v2040_v33 = vadd.f32 %v1788_v31, %v374_v26  ;;  %1999 = vmatmul.mubr.bf16.gmra.mrb[108].mxu1 %v4232_v24 }
 0x201   : > { %1717 = vmatprep.mubr.bf16.mxu0 %v4233_v25  ;;  %2006 = vmatprep.mubr.bf16.mxu1 %v4235_v29  ;;  %v381_v25 = vld [vmem:[#allocation2 + $0x40] sm:$0xff] }
 0x202   : > { %2104 = vst [vmem:[#allocation2 + $0x8] sm:$0xff] %v2040_v33  ;;  %v382_v33 = vld [vmem:[#allocation2 + $0x48] sm:$0xff] }
 0x203   : > { %v1503_v34 = vpop.f32.mrb[4].mxu0  ;;  %v1792_v36 = vpop.f32.mrb[4].mxu1 }
 0x204   : > { %v1505_v37 = vpop.f32.mrb[5].mxu0  ;;  %v1793_v39 = vadd.f32 %v1792_v36, %v1503_v34  ;;  %v1794_v40 = vpop.f32.mrb[5].mxu1 }
 0x205   : > { %v1506_v41 = vpop.f32.mrb[6].mxu0  ;;  %v1795_v45 = vpop.f32.mrb[6].mxu1 }
 0x206   : > { %v1508_v46 = vpop.f32.mrb[7].mxu0  ;;  %v2041_v48 = vadd.f32 %v1793_v39, %v375_v35  ;;  %v1796_v49 = vadd.f32 %v1795_v45, %v1506_v41  ;;  %v1797_v50 = vpop.f32.mrb[7].mxu1  ;;  %v383_v41 = vld [vmem:[#allocation2 + $0x50] sm:$0xff] }
 0x208   : > { %1718 = vmatmul.mubr.bf16.gmra.mrb[112].mxu0 %v4237_v38  ;;  %2105 = vst [vmem:[#allocation2 + $0x10] sm:$0xff] %v2041_v48  ;;  %v2042_v51 = vadd.f32 %v1796_v49, %v376_v44  ;;  %2007 = vmatmul.mubr.bf16.gmra.mrb[112].mxu1 %v4238_v42 }
 0x209   : > { %1725 = vmatprep.mubr.bf16.mxu0 %v4239_v43  ;;  %2014 = vmatprep.mubr.bf16.mxu1 %v4241_v47  ;;  %v384_v47 = vld [vmem:[#allocation2 + $0x58] sm:$0xff] }
 0x20a   : > { %2106 = vst [vmem:[#allocation2 + $0x18] sm:$0xff] %v2042_v51 }
 0x20b   : > { %v1511_v52 = vpop.f32.mrb[8].mxu0  ;;  %v1800_v54 = vpop.f32.mrb[8].mxu1 }
 0x20c   : > { %v1513_v55 = vpop.f32.mrb[9].mxu0  ;;  %v1801_v57 = vadd.f32 %v1800_v54, %v1511_v52  ;;  %v1802_v58 = vpop.f32.mrb[9].mxu1 }
 0x20d   : > { %v1514_v59 = vpop.f32.mrb[10].mxu0  ;;  %v1803_v63 = vpop.f32.mrb[10].mxu1  ;;  %v385_v55 = vld [vmem:[#allocation2 + $0x60] sm:$0xff] }
 0x20e   : > { %v1516_v0 = vpop.f32.mrb[11].mxu0  ;;  %v2043_v2 = vadd.f32 %v1801_v57, %v377_v53  ;;  %v1804_v3 = vadd.f32 %v1803_v63, %v1514_v59  ;;  %v1805_v4 = vpop.f32.mrb[11].mxu1 }
 0x210   : > { %1726 = vmatmul.mubr.bf16.gmra.mrb[116].mxu0 %v4243_v56  ;;  %2107 = vst [vmem:[#allocation2 + $0x20] sm:$0xff] %v2043_v2  ;;  %v2044_v5 = vadd.f32 %v1804_v3, %v378_v62  ;;  %2015 = vmatmul.mubr.bf16.gmra.mrb[116].mxu1 %v4244_v60 }
 0x211   : > { %1733 = vmatprep.mubr.bf16.mxu0 %v4245_v61  ;;  %2022 = vmatprep.mubr.bf16.mxu1 %v4247_v1  ;;  %v386_v61 = vld [vmem:[#allocation2 + $0x68] sm:$0xff] }
 0x212   : > { %2108 = vst [vmem:[#allocation2 + $0x28] sm:$0xff] %v2044_v5  ;;  %v387_v5 = vld [vmem:[#allocation2 + $0x70] sm:$0xff] }
 0x213   : > { %v1519_v6 = vpop.f32.mrb[12].mxu0  ;;  %v1808_v8 = vpop.f32.mrb[12].mxu1 }
 0x214   : > { %v1521_v9 = vpop.f32.mrb[13].mxu0  ;;  %v1809_v11 = vadd.f32 %v1808_v8, %v1519_v6  ;;  %v1810_v12 = vpop.f32.mrb[13].mxu1 }
 0x215   : > { %v1522_v13 = vpop.f32.mrb[14].mxu0  ;;  %v1811_v17 = vpop.f32.mrb[14].mxu1 }
 0x216   : > { %v1524_v18 = vpop.f32.mrb[15].mxu0  ;;  %v2045_v20 = vadd.f32 %v1809_v11, %v379_v7  ;;  %v1812_v21 = vadd.f32 %v1811_v17, %v1522_v13  ;;  %v1813_v22 = vpop.f32.mrb[15].mxu1  ;;  %v388_v11 = vld [vmem:[#allocation2 + $0x78] sm:$0xff] }
 0x218   : > { %1734 = vmatmul.mubr.bf16.gmra.mrb[120].mxu0 %v4249_v10  ;;  %2109 = vst [vmem:[#allocation2 + $0x30] sm:$0xff] %v2045_v20  ;;  %v2046_v23 = vadd.f32 %v1812_v21, %v380_v16  ;;  %2023 = vmatmul.mubr.bf16.gmra.mrb[120].mxu1 %v4250_v14 }
 0x219   : > { %1741 = vmatprep.mubr.bf16.mxu0 %v4251_v15  ;;  %2030 = vmatprep.mubr.bf16.mxu1 %v4253_v19  ;;  %v389_v19 = vld [vmem:[#allocation2 + $0x80] sm:$0xff] }
 0x21a   : > { %2110 = vst [vmem:[#allocation2 + $0x38] sm:$0xff] %v2046_v23 }
 0x21b   : > { %v1527_v24 = vpop.f32.mrb[16].mxu0  ;;  %v1816_v26 = vpop.f32.mrb[16].mxu1 }
 0x21c   : > { %v1529_v27 = vpop.f32.mrb[17].mxu0  ;;  %v1817_v29 = vadd.f32 %v1816_v26, %v1527_v24  ;;  %v1818_v30 = vpop.f32.mrb[17].mxu1 }
 0x21d   : > { %v1530_v31 = vpop.f32.mrb[18].mxu0  ;;  %v1819_v34 = vpop.f32.mrb[18].mxu1 }
 0x21e   : > { %v1532_v35 = vpop.f32.mrb[19].mxu0  ;;  %v2047_v36 = vadd.f32 %v1817_v29, %v381_v25  ;;  %v1820_v37 = vadd.f32 %v1819_v34, %v1530_v31  ;;  %v1821_v38 = vpop.f32.mrb[19].mxu1  ;;  %v390_v25 = vld [vmem:[#allocation2 + $0x88] sm:$0xff] }
 0x220   : > { %1742 = vmatmul.mubr.bf16.gmra.mrb[124].mxu0 %v4255_v28  ;;  %2111 = vst [vmem:[#allocation2 + $0x40] sm:$0xff] %v2047_v36  ;;  %v2048_v39 = vadd.f32 %v1820_v37, %v382_v33  ;;  %2031 = vmatmul.mubr.bf16.gmra.mrb[124].mxu1 %v4256_v32  ;;  %v391_v33 = vld [vmem:[#allocation2 + $0x90] sm:$0xff] }
 0x222   : > { %2112 = vst [vmem:[#allocation2 + $0x48] sm:$0xff] %v2048_v39  ;;  %v392_v39 = vld [vmem:[#allocation2 + $0x98] sm:$0xff] }
 0x223   : > { %v1535_v40 = vpop.f32.mrb[20].mxu0  ;;  %v1824_v42 = vpop.f32.mrb[20].mxu1 }
 0x224   : > { %v1537_v43 = vpop.f32.mrb[21].mxu0  ;;  %v1825_v44 = vadd.f32 %v1824_v42, %v1535_v40  ;;  %v1826_v45 = vpop.f32.mrb[21].mxu1 }
 0x225   : > { %v1538_v46 = vpop.f32.mrb[22].mxu0  ;;  %v1827_v48 = vpop.f32.mrb[22].mxu1 }
 0x226   : > { %v1540_v49 = vpop.f32.mrb[23].mxu0  ;;  %v2049_v50 = vadd.f32 %v1825_v44, %v383_v41  ;;  %v1828_v51 = vadd.f32 %v1827_v48, %v1538_v46  ;;  %v1829_v52 = vpop.f32.mrb[23].mxu1 }
 0x228   : > { %2113 = vst [vmem:[#allocation2 + $0x50] sm:$0xff] %v2049_v50  ;;  %v2050_v53 = vadd.f32 %v1828_v51, %v384_v47  ;;  %v393_v47 = vld [vmem:[#allocation2 + $0xa0] sm:$0xff] }
 0x22a   : > { %2114 = vst [vmem:[#allocation2 + $0x58] sm:$0xff] %v2050_v53  ;;  %v394_v53 = vld [vmem:[#allocation2 + $0xa8] sm:$0xff] }
 0x22b   : > { %v1543_v54 = vpop.f32.mrb[24].mxu0  ;;  %v1832_v56 = vpop.f32.mrb[24].mxu1 }
 0x22c   : > { %v1545_v57 = vpop.f32.mrb[25].mxu0  ;;  %v1833_v58 = vadd.f32 %v1832_v56, %v1543_v54  ;;  %v1834_v59 = vpop.f32.mrb[25].mxu1 }
 0x22d   : > { %v1546_v60 = vpop.f32.mrb[26].mxu0  ;;  %v1835_v62 = vpop.f32.mrb[26].mxu1 }
 0x22e   : > { %v1548_v63 = vpop.f32.mrb[27].mxu0  ;;  %v2051_v0 = vadd.f32 %v1833_v58, %v385_v55  ;;  %v1836_v1 = vadd.f32 %v1835_v62, %v1546_v60  ;;  %v1837_v2 = vpop.f32.mrb[27].mxu1 }
 0x230   : > { %2115 = vst [vmem:[#allocation2 + $0x60] sm:$0xff] %v2051_v0  ;;  %v2052_v3 = vadd.f32 %v1836_v1, %v386_v61  ;;  %v395_v61 = vld [vmem:[#allocation2 + $0xb0] sm:$0xff] }
 0x232   : > { %2116 = vst [vmem:[#allocation2 + $0x68] sm:$0xff] %v2052_v3  ;;  %v396_v3 = vld [vmem:[#allocation2 + $0xb8] sm:$0xff] }
 0x233   : > { %v1551_v4 = vpop.f32.mrb[28].mxu0  ;;  %v1840_v6 = vpop.f32.mrb[28].mxu1 }
 0x234   : > { %v1553_v7 = vpop.f32.mrb[29].mxu0  ;;  %v1841_v8 = vadd.f32 %v1840_v6, %v1551_v4  ;;  %v1842_v9 = vpop.f32.mrb[29].mxu1 }
 0x235   : > { %v1554_v10 = vpop.f32.mrb[30].mxu0  ;;  %v1843_v12 = vpop.f32.mrb[30].mxu1 }
 0x236   : > { %v1556_v13 = vpop.f32.mrb[31].mxu0  ;;  %v2053_v14 = vadd.f32 %v1841_v8, %v387_v5  ;;  %v1844_v15 = vadd.f32 %v1843_v12, %v1554_v10  ;;  %v1845_v16 = vpop.f32.mrb[31].mxu1 }
 0x238   : > { %2117 = vst [vmem:[#allocation2 + $0x70] sm:$0xff] %v2053_v14  ;;  %v2054_v17 = vadd.f32 %v1844_v15, %v388_v11  ;;  %v397_v11 = vld [vmem:[#allocation2 + $0xc0] sm:$0xff] }
 0x23a   : > { %2118 = vst [vmem:[#allocation2 + $0x78] sm:$0xff] %v2054_v17  ;;  %v398_v17 = vld [vmem:[#allocation2 + $0xc8] sm:$0xff] }
 0x23b   : > { %v1559_v18 = vpop.f32.mrb[32].mxu0  ;;  %v1848_v20 = vpop.f32.mrb[32].mxu1 }
 0x23c   : > { %v1561_v21 = vpop.f32.mrb[33].mxu0  ;;  %v1849_v22 = vadd.f32 %v1848_v20, %v1559_v18  ;;  %v1850_v23 = vpop.f32.mrb[33].mxu1 }
 0x23d   : > { %v1562_v24 = vpop.f32.mrb[34].mxu0  ;;  %v1851_v26 = vpop.f32.mrb[34].mxu1 }
 0x23e   : > { %v1564_v27 = vpop.f32.mrb[35].mxu0  ;;  %v2055_v28 = vadd.f32 %v1849_v22, %v389_v19  ;;  %v1852_v29 = vadd.f32 %v1851_v26, %v1562_v24  ;;  %v1853_v30 = vpop.f32.mrb[35].mxu1 }
 0x240   : > { %2119 = vst [vmem:[#allocation2 + $0x80] sm:$0xff] %v2055_v28  ;;  %v2056_v31 = vadd.f32 %v1852_v29, %v390_v25  ;;  %v399_v25 = vld [vmem:[#allocation2 + $0xd0] sm:$0xff] }
 0x242   : > { %2120 = vst [vmem:[#allocation2 + $0x88] sm:$0xff] %v2056_v31  ;;  %v400_v31 = vld [vmem:[#allocation2 + $0xd8] sm:$0xff] }
 0x243   : > { %v1567_v32 = vpop.f32.mrb[36].mxu0  ;;  %v1856_v34 = vpop.f32.mrb[36].mxu1 }
 0x244   : > { %v1569_v35 = vpop.f32.mrb[37].mxu0  ;;  %v1857_v36 = vadd.f32 %v1856_v34, %v1567_v32  ;;  %v1858_v37 = vpop.f32.mrb[37].mxu1 }
 0x245   : > { %v1570_v38 = vpop.f32.mrb[38].mxu0  ;;  %v1859_v40 = vpop.f32.mrb[38].mxu1 }
 0x246   : > { %v1572_v41 = vpop.f32.mrb[39].mxu0  ;;  %v2057_v42 = vadd.f32 %v1857_v36, %v391_v33  ;;  %v1860_v43 = vadd.f32 %v1859_v40, %v1570_v38  ;;  %v1861_v44 = vpop.f32.mrb[39].mxu1 }
 0x248   : > { %2121 = vst [vmem:[#allocation2 + $0x90] sm:$0xff] %v2057_v42  ;;  %v2058_v45 = vadd.f32 %v1860_v43, %v392_v39  ;;  %v401_v39 = vld [vmem:[#allocation2 + $0xe0] sm:$0xff] }
 0x24a   : > { %2122 = vst [vmem:[#allocation2 + $0x98] sm:$0xff] %v2058_v45  ;;  %v402_v45 = vld [vmem:[#allocation2 + $0xe8] sm:$0xff] }
 0x24b   : > { %v1575_v46 = vpop.f32.mrb[40].mxu0  ;;  %v1864_v48 = vpop.f32.mrb[40].mxu1 }
 0x24c   : > { %v1577_v49 = vpop.f32.mrb[41].mxu0  ;;  %v1865_v50 = vadd.f32 %v1864_v48, %v1575_v46  ;;  %v1866_v51 = vpop.f32.mrb[41].mxu1 }
 0x24d   : > { %v1578_v52 = vpop.f32.mrb[42].mxu0  ;;  %v1867_v54 = vpop.f32.mrb[42].mxu1 }
 0x24e   : > { %v1580_v55 = vpop.f32.mrb[43].mxu0  ;;  %v2059_v56 = vadd.f32 %v1865_v50, %v393_v47  ;;  %v1868_v57 = vadd.f32 %v1867_v54, %v1578_v52  ;;  %v1869_v58 = vpop.f32.mrb[43].mxu1 }
 0x250   : > { %2123 = vst [vmem:[#allocation2 + $0xa0] sm:$0xff] %v2059_v56  ;;  %v2060_v59 = vadd.f32 %v1868_v57, %v394_v53  ;;  %v403_v53 = vld [vmem:[#allocation2 + $0xf0] sm:$0xff] }
 0x252   : > { %2124 = vst [vmem:[#allocation2 + $0xa8] sm:$0xff] %v2060_v59  ;;  %v404_v59 = vld [vmem:[#allocation2 + $0xf8] sm:$0xff] }
 0x253   : > { %v1583_v60 = vpop.f32.mrb[44].mxu0  ;;  %v1872_v62 = vpop.f32.mrb[44].mxu1 }
 0x254   : > { %v1585_v63 = vpop.f32.mrb[45].mxu0  ;;  %v1873_v0 = vadd.f32 %v1872_v62, %v1583_v60  ;;  %v1874_v1 = vpop.f32.mrb[45].mxu1 }
 0x255   : > { %v1586_v2 = vpop.f32.mrb[46].mxu0  ;;  %v1875_v4 = vpop.f32.mrb[46].mxu1 }
 0x256   : > { %v1588_v5 = vpop.f32.mrb[47].mxu0  ;;  %v2061_v6 = vadd.f32 %v1873_v0, %v395_v61  ;;  %v1876_v7 = vadd.f32 %v1875_v4, %v1586_v2  ;;  %v1877_v8 = vpop.f32.mrb[47].mxu1 }
 0x258   : > { %2125 = vst [vmem:[#allocation2 + $0xb0] sm:$0xff] %v2061_v6  ;;  %v2062_v9 = vadd.f32 %v1876_v7, %v396_v3  ;;  %v405_v3 = vld [vmem:[#allocation2 + $0x100] sm:$0xff] }
 0x25a   : > { %2126 = vst [vmem:[#allocation2 + $0xb8] sm:$0xff] %v2062_v9  ;;  %v406_v9 = vld [vmem:[#allocation2 + $0x108] sm:$0xff] }
 0x25b   : > { %v1591_v10 = vpop.f32.mrb[48].mxu0  ;;  %v1880_v12 = vpop.f32.mrb[48].mxu1 }
 0x25c   : > { %v1593_v13 = vpop.f32.mrb[49].mxu0  ;;  %v1881_v14 = vadd.f32 %v1880_v12, %v1591_v10  ;;  %v1882_v15 = vpop.f32.mrb[49].mxu1 }
 0x25d   : > { %v1594_v16 = vpop.f32.mrb[50].mxu0  ;;  %v1883_v18 = vpop.f32.mrb[50].mxu1 }
 0x25e   : > { %v1596_v19 = vpop.f32.mrb[51].mxu0  ;;  %v2063_v20 = vadd.f32 %v1881_v14, %v397_v11  ;;  %v1884_v21 = vadd.f32 %v1883_v18, %v1594_v16  ;;  %v1885_v22 = vpop.f32.mrb[51].mxu1 }
 0x260   : > { %2127 = vst [vmem:[#allocation2 + $0xc0] sm:$0xff] %v2063_v20  ;;  %v2064_v23 = vadd.f32 %v1884_v21, %v398_v17  ;;  %v407_v17 = vld [vmem:[#allocation2 + $0x110] sm:$0xff] }
 0x262   : > { %2128 = vst [vmem:[#allocation2 + $0xc8] sm:$0xff] %v2064_v23  ;;  %v408_v23 = vld [vmem:[#allocation2 + $0x118] sm:$0xff] }
 0x263   : > { %v1599_v24 = vpop.f32.mrb[52].mxu0  ;;  %v1888_v26 = vpop.f32.mrb[52].mxu1 }
 0x264   : > { %v1601_v27 = vpop.f32.mrb[53].mxu0  ;;  %v1889_v28 = vadd.f32 %v1888_v26, %v1599_v24  ;;  %v1890_v29 = vpop.f32.mrb[53].mxu1 }
 0x265   : > { %v1602_v30 = vpop.f32.mrb[54].mxu0  ;;  %v1891_v32 = vpop.f32.mrb[54].mxu1 }
 0x266   : > { %v1604_v33 = vpop.f32.mrb[55].mxu0  ;;  %v2065_v34 = vadd.f32 %v1889_v28, %v399_v25  ;;  %v1892_v35 = vadd.f32 %v1891_v32, %v1602_v30  ;;  %v1893_v36 = vpop.f32.mrb[55].mxu1 }
 0x268   : > { %2129 = vst [vmem:[#allocation2 + $0xd0] sm:$0xff] %v2065_v34  ;;  %v2066_v37 = vadd.f32 %v1892_v35, %v400_v31  ;;  %v409_v31 = vld [vmem:[#allocation2 + $0x120] sm:$0xff] }
 0x26a   : > { %2130 = vst [vmem:[#allocation2 + $0xd8] sm:$0xff] %v2066_v37  ;;  %v410_v37 = vld [vmem:[#allocation2 + $0x128] sm:$0xff] }
 0x26b   : > { %v1607_v38 = vpop.f32.mrb[56].mxu0  ;;  %v1896_v40 = vpop.f32.mrb[56].mxu1 }
 0x26c   : > { %v1609_v41 = vpop.f32.mrb[57].mxu0  ;;  %v1897_v42 = vadd.f32 %v1896_v40, %v1607_v38  ;;  %v1898_v43 = vpop.f32.mrb[57].mxu1 }
 0x26d   : > { %v1610_v44 = vpop.f32.mrb[58].mxu0  ;;  %v1899_v46 = vpop.f32.mrb[58].mxu1 }
 0x26e   : > { %v1612_v47 = vpop.f32.mrb[59].mxu0  ;;  %v2067_v48 = vadd.f32 %v1897_v42, %v401_v39  ;;  %v1900_v49 = vadd.f32 %v1899_v46, %v1610_v44  ;;  %v1901_v50 = vpop.f32.mrb[59].mxu1 }
 0x270   : > { %2131 = vst [vmem:[#allocation2 + $0xe0] sm:$0xff] %v2067_v48  ;;  %v2068_v51 = vadd.f32 %v1900_v49, %v402_v45  ;;  %v411_v45 = vld [vmem:[#allocation2 + $0x130] sm:$0xff] }
 0x272   : > { %2132 = vst [vmem:[#allocation2 + $0xe8] sm:$0xff] %v2068_v51  ;;  %v412_v51 = vld [vmem:[#allocation2 + $0x138] sm:$0xff] }
 0x273   : > { %v1615_v52 = vpop.f32.mrb[60].mxu0  ;;  %v1904_v54 = vpop.f32.mrb[60].mxu1 }
 0x274   : > { %v1617_v55 = vpop.f32.mrb[61].mxu0  ;;  %v1905_v56 = vadd.f32 %v1904_v54, %v1615_v52  ;;  %v1906_v57 = vpop.f32.mrb[61].mxu1 }
 0x275   : > { %v1618_v58 = vpop.f32.mrb[62].mxu0  ;;  %v1907_v60 = vpop.f32.mrb[62].mxu1 }
 0x276   : > { %v1620_v61 = vpop.f32.mrb[63].mxu0  ;;  %v2069_v62 = vadd.f32 %v1905_v56, %v403_v53  ;;  %v1908_v63 = vadd.f32 %v1907_v60, %v1618_v58  ;;  %v1909_v0 = vpop.f32.mrb[63].mxu1 }
 0x278   : > { %2133 = vst [vmem:[#allocation2 + $0xf0] sm:$0xff] %v2069_v62  ;;  %v2070_v1 = vadd.f32 %v1908_v63, %v404_v59  ;;  %v413_v59 = vld [vmem:[#allocation2 + $0x140] sm:$0xff] }
 0x27a   : > { %2134 = vst [vmem:[#allocation2 + $0xf8] sm:$0xff] %v2070_v1  ;;  %v414_v1 = vld [vmem:[#allocation2 + $0x148] sm:$0xff] }
 0x27b   : > { %v1623_v2 = vpop.f32.mrb[64].mxu0  ;;  %v1912_v4 = vpop.f32.mrb[64].mxu1 }
 0x27c   : > { %v1625_v5 = vpop.f32.mrb[65].mxu0  ;;  %v1913_v6 = vadd.f32 %v1912_v4, %v1623_v2  ;;  %v1914_v7 = vpop.f32.mrb[65].mxu1 }
 0x27d   : > { %v1626_v8 = vpop.f32.mrb[66].mxu0  ;;  %v1915_v10 = vpop.f32.mrb[66].mxu1 }
 0x27e   : > { %v1628_v11 = vpop.f32.mrb[67].mxu0  ;;  %v2071_v12 = vadd.f32 %v1913_v6, %v405_v3  ;;  %v1916_v13 = vadd.f32 %v1915_v10, %v1626_v8  ;;  %v1917_v14 = vpop.f32.mrb[67].mxu1 }
 0x280   : > { %2135 = vst [vmem:[#allocation2 + $0x100] sm:$0xff] %v2071_v12  ;;  %v2072_v15 = vadd.f32 %v1916_v13, %v406_v9  ;;  %v415_v9 = vld [vmem:[#allocation2 + $0x150] sm:$0xff] }
 0x282   : > { %2136 = vst [vmem:[#allocation2 + $0x108] sm:$0xff] %v2072_v15  ;;  %v416_v15 = vld [vmem:[#allocation2 + $0x158] sm:$0xff] }
 0x283   : > { %v1631_v16 = vpop.f32.mrb[68].mxu0  ;;  %v1920_v18 = vpop.f32.mrb[68].mxu1 }
 0x284   : > { %v1633_v19 = vpop.f32.mrb[69].mxu0  ;;  %v1921_v20 = vadd.f32 %v1920_v18, %v1631_v16  ;;  %v1922_v21 = vpop.f32.mrb[69].mxu1 }
 0x285   : > { %v1634_v22 = vpop.f32.mrb[70].mxu0  ;;  %v1923_v24 = vpop.f32.mrb[70].mxu1 }
 0x286   : > { %v1636_v25 = vpop.f32.mrb[71].mxu0  ;;  %v2073_v26 = vadd.f32 %v1921_v20, %v407_v17  ;;  %v1924_v27 = vadd.f32 %v1923_v24, %v1634_v22  ;;  %v1925_v28 = vpop.f32.mrb[71].mxu1 }
 0x288   : > { %2137 = vst [vmem:[#allocation2 + $0x110] sm:$0xff] %v2073_v26  ;;  %v2074_v29 = vadd.f32 %v1924_v27, %v408_v23  ;;  %v417_v23 = vld [vmem:[#allocation2 + $0x160] sm:$0xff] }
 0x28a   : > { %2138 = vst [vmem:[#allocation2 + $0x118] sm:$0xff] %v2074_v29  ;;  %v418_v29 = vld [vmem:[#allocation2 + $0x168] sm:$0xff] }
 0x28b   : > { %v1639_v30 = vpop.f32.mrb[72].mxu0  ;;  %v1928_v32 = vpop.f32.mrb[72].mxu1 }
 0x28c   : > { %v1641_v33 = vpop.f32.mrb[73].mxu0  ;;  %v1929_v34 = vadd.f32 %v1928_v32, %v1639_v30  ;;  %v1930_v35 = vpop.f32.mrb[73].mxu1 }
 0x28d   : > { %v1642_v36 = vpop.f32.mrb[74].mxu0  ;;  %v1931_v38 = vpop.f32.mrb[74].mxu1 }
 0x28e   : > { %v1644_v39 = vpop.f32.mrb[75].mxu0  ;;  %v2075_v40 = vadd.f32 %v1929_v34, %v409_v31  ;;  %v1932_v41 = vadd.f32 %v1931_v38, %v1642_v36  ;;  %v1933_v42 = vpop.f32.mrb[75].mxu1 }
 0x290   : > { %2139 = vst [vmem:[#allocation2 + $0x120] sm:$0xff] %v2075_v40  ;;  %v2076_v43 = vadd.f32 %v1932_v41, %v410_v37  ;;  %v419_v37 = vld [vmem:[#allocation2 + $0x170] sm:$0xff] }
 0x292   : > { %2140 = vst [vmem:[#allocation2 + $0x128] sm:$0xff] %v2076_v43  ;;  %v420_v43 = vld [vmem:[#allocation2 + $0x178] sm:$0xff] }
 0x293   : > { %v1647_v44 = vpop.f32.mrb[76].mxu0  ;;  %v1936_v46 = vpop.f32.mrb[76].mxu1 }
 0x294   : > { %v1649_v47 = vpop.f32.mrb[77].mxu0  ;;  %v1937_v48 = vadd.f32 %v1936_v46, %v1647_v44  ;;  %v1938_v49 = vpop.f32.mrb[77].mxu1 }
 0x295   : > { %v1650_v50 = vpop.f32.mrb[78].mxu0  ;;  %v1939_v52 = vpop.f32.mrb[78].mxu1 }
 0x296   : > { %v1652_v53 = vpop.f32.mrb[79].mxu0  ;;  %v2077_v54 = vadd.f32 %v1937_v48, %v411_v45  ;;  %v1940_v55 = vadd.f32 %v1939_v52, %v1650_v50  ;;  %v1941_v56 = vpop.f32.mrb[79].mxu1 }
 0x298   : > { %2141 = vst [vmem:[#allocation2 + $0x130] sm:$0xff] %v2077_v54  ;;  %v2078_v57 = vadd.f32 %v1940_v55, %v412_v51  ;;  %v421_v51 = vld [vmem:[#allocation2 + $0x180] sm:$0xff] }
 0x29a   : > { %2142 = vst [vmem:[#allocation2 + $0x138] sm:$0xff] %v2078_v57  ;;  %v422_v57 = vld [vmem:[#allocation2 + $0x188] sm:$0xff] }
 0x29b   : > { %v1655_v58 = vpop.f32.mrb[80].mxu0  ;;  %v1944_v60 = vpop.f32.mrb[80].mxu1 }
 0x29c   : > { %v1657_v61 = vpop.f32.mrb[81].mxu0  ;;  %v1945_v62 = vadd.f32 %v1944_v60, %v1655_v58  ;;  %v1946_v63 = vpop.f32.mrb[81].mxu1 }
 0x29d   : > { %v1658_v0 = vpop.f32.mrb[82].mxu0  ;;  %v1947_v2 = vpop.f32.mrb[82].mxu1 }
 0x29e   : > { %v1660_v3 = vpop.f32.mrb[83].mxu0  ;;  %v2079_v4 = vadd.f32 %v1945_v62, %v413_v59  ;;  %v1948_v5 = vadd.f32 %v1947_v2, %v1658_v0  ;;  %v1949_v6 = vpop.f32.mrb[83].mxu1 }
 0x2a0   : > { %2143 = vst [vmem:[#allocation2 + $0x140] sm:$0xff] %v2079_v4  ;;  %v2080_v7 = vadd.f32 %v1948_v5, %v414_v1  ;;  %v423_v1 = vld [vmem:[#allocation2 + $0x190] sm:$0xff] }
 0x2a2   : > { %2144 = vst [vmem:[#allocation2 + $0x148] sm:$0xff] %v2080_v7  ;;  %v424_v7 = vld [vmem:[#allocation2 + $0x198] sm:$0xff] }
 0x2a3   : > { %v1663_v8 = vpop.f32.mrb[84].mxu0  ;;  %v1952_v10 = vpop.f32.mrb[84].mxu1 }
 0x2a4   : > { %v1665_v11 = vpop.f32.mrb[85].mxu0  ;;  %v1953_v12 = vadd.f32 %v1952_v10, %v1663_v8  ;;  %v1954_v13 = vpop.f32.mrb[85].mxu1 }
 0x2a5   : > { %v1666_v14 = vpop.f32.mrb[86].mxu0  ;;  %v1955_v16 = vpop.f32.mrb[86].mxu1 }
 0x2a6   : > { %v1668_v17 = vpop.f32.mrb[87].mxu0  ;;  %v2081_v18 = vadd.f32 %v1953_v12, %v415_v9  ;;  %v1956_v19 = vadd.f32 %v1955_v16, %v1666_v14  ;;  %v1957_v20 = vpop.f32.mrb[87].mxu1 }
 0x2a8   : > { %2145 = vst [vmem:[#allocation2 + $0x150] sm:$0xff] %v2081_v18  ;;  %v2082_v21 = vadd.f32 %v1956_v19, %v416_v15  ;;  %v425_v15 = vld [vmem:[#allocation2 + $0x1a0] sm:$0xff] }
 0x2aa   : > { %2146 = vst [vmem:[#allocation2 + $0x158] sm:$0xff] %v2082_v21  ;;  %v426_v21 = vld [vmem:[#allocation2 + $0x1a8] sm:$0xff] }
 0x2ab   : > { %v1671_v22 = vpop.f32.mrb[88].mxu0  ;;  %v1960_v24 = vpop.f32.mrb[88].mxu1 }
 0x2ac   : > { %v1673_v25 = vpop.f32.mrb[89].mxu0  ;;  %v1961_v26 = vadd.f32 %v1960_v24, %v1671_v22  ;;  %v1962_v27 = vpop.f32.mrb[89].mxu1 }
 0x2ad   : > { %v1674_v28 = vpop.f32.mrb[90].mxu0  ;;  %v1963_v30 = vpop.f32.mrb[90].mxu1 }
 0x2ae   : > { %v1676_v31 = vpop.f32.mrb[91].mxu0  ;;  %v2083_v32 = vadd.f32 %v1961_v26, %v417_v23  ;;  %v1964_v33 = vadd.f32 %v1963_v30, %v1674_v28  ;;  %v1965_v34 = vpop.f32.mrb[91].mxu1 }
 0x2b0   : > { %2147 = vst [vmem:[#allocation2 + $0x160] sm:$0xff] %v2083_v32  ;;  %v2084_v35 = vadd.f32 %v1964_v33, %v418_v29  ;;  %v427_v29 = vld [vmem:[#allocation2 + $0x1b0] sm:$0xff] }
 0x2b2   : > { %2148 = vst [vmem:[#allocation2 + $0x168] sm:$0xff] %v2084_v35  ;;  %v428_v35 = vld [vmem:[#allocation2 + $0x1b8] sm:$0xff] }
 0x2b3   : > { %v1679_v36 = vpop.f32.mrb[92].mxu0  ;;  %v1968_v38 = vpop.f32.mrb[92].mxu1 }
 0x2b4   : > { %v1681_v39 = vpop.f32.mrb[93].mxu0  ;;  %v1969_v40 = vadd.f32 %v1968_v38, %v1679_v36  ;;  %v1970_v41 = vpop.f32.mrb[93].mxu1 }
 0x2b5   : > { %v1682_v42 = vpop.f32.mrb[94].mxu0  ;;  %v1971_v44 = vpop.f32.mrb[94].mxu1 }
 0x2b6   : > { %v1684_v45 = vpop.f32.mrb[95].mxu0  ;;  %v2085_v46 = vadd.f32 %v1969_v40, %v419_v37  ;;  %v1972_v47 = vadd.f32 %v1971_v44, %v1682_v42  ;;  %v1973_v48 = vpop.f32.mrb[95].mxu1 }
 0x2b8   : > { %2149 = vst [vmem:[#allocation2 + $0x170] sm:$0xff] %v2085_v46  ;;  %v2086_v49 = vadd.f32 %v1972_v47, %v420_v43  ;;  %v429_v43 = vld [vmem:[#allocation2 + $0x1c0] sm:$0xff] }
 0x2ba   : > { %2150 = vst [vmem:[#allocation2 + $0x178] sm:$0xff] %v2086_v49  ;;  %v430_v49 = vld [vmem:[#allocation2 + $0x1c8] sm:$0xff] }
 0x2bb   : > { %v1687_v50 = vpop.f32.mrb[96].mxu0  ;;  %v1976_v52 = vpop.f32.mrb[96].mxu1 }
 0x2bc   : > { %v1689_v53 = vpop.f32.mrb[97].mxu0  ;;  %v1977_v54 = vadd.f32 %v1976_v52, %v1687_v50  ;;  %v1978_v55 = vpop.f32.mrb[97].mxu1 }
 0x2bd   : > { %v1690_v56 = vpop.f32.mrb[98].mxu0  ;;  %v1979_v58 = vpop.f32.mrb[98].mxu1 }
 0x2be   : > { %v1692_v59 = vpop.f32.mrb[99].mxu0  ;;  %v2087_v60 = vadd.f32 %v1977_v54, %v421_v51  ;;  %v1980_v61 = vadd.f32 %v1979_v58, %v1690_v56  ;;  %v1981_v62 = vpop.f32.mrb[99].mxu1 }
 0x2c0   : > { %2151 = vst [vmem:[#allocation2 + $0x180] sm:$0xff] %v2087_v60  ;;  %v2088_v63 = vadd.f32 %v1980_v61, %v422_v57  ;;  %v431_v57 = vld [vmem:[#allocation2 + $0x1d0] sm:$0xff] }
 0x2c2   : > { %2152 = vst [vmem:[#allocation2 + $0x188] sm:$0xff] %v2088_v63  ;;  %v432_v63 = vld [vmem:[#allocation2 + $0x1d8] sm:$0xff] }
 0x2c3   : > { %v1695_v0 = vpop.f32.mrb[100].mxu0  ;;  %v1984_v2 = vpop.f32.mrb[100].mxu1 }
 0x2c4   : > { %v1697_v3 = vpop.f32.mrb[101].mxu0  ;;  %v1985_v4 = vadd.f32 %v1984_v2, %v1695_v0  ;;  %v1986_v5 = vpop.f32.mrb[101].mxu1 }
 0x2c5   : > { %v1698_v6 = vpop.f32.mrb[102].mxu0  ;;  %v1987_v8 = vpop.f32.mrb[102].mxu1 }
 0x2c6   : > { %v1700_v9 = vpop.f32.mrb[103].mxu0  ;;  %v2089_v10 = vadd.f32 %v1985_v4, %v423_v1  ;;  %v1988_v11 = vadd.f32 %v1987_v8, %v1698_v6  ;;  %v1989_v12 = vpop.f32.mrb[103].mxu1 }
 0x2c8   : > { %2153 = vst [vmem:[#allocation2 + $0x190] sm:$0xff] %v2089_v10  ;;  %v2090_v13 = vadd.f32 %v1988_v11, %v424_v7  ;;  %v433_v7 = vld [vmem:[#allocation2 + $0x1e0] sm:$0xff] }
 0x2ca   : > { %2154 = vst [vmem:[#allocation2 + $0x198] sm:$0xff] %v2090_v13  ;;  %v434_v13 = vld [vmem:[#allocation2 + $0x1e8] sm:$0xff] }
 0x2cb   : > { %v1703_v14 = vpop.f32.mrb[104].mxu0  ;;  %v1992_v16 = vpop.f32.mrb[104].mxu1 }
 0x2cc   : > { %v1705_v17 = vpop.f32.mrb[105].mxu0  ;;  %v1993_v18 = vadd.f32 %v1992_v16, %v1703_v14  ;;  %v1994_v19 = vpop.f32.mrb[105].mxu1 }
 0x2cd   : > { %v1706_v20 = vpop.f32.mrb[106].mxu0  ;;  %v1995_v22 = vpop.f32.mrb[106].mxu1 }
 0x2ce   : > { %v1708_v23 = vpop.f32.mrb[107].mxu0  ;;  %v2091_v24 = vadd.f32 %v1993_v18, %v425_v15  ;;  %v1996_v25 = vadd.f32 %v1995_v22, %v1706_v20  ;;  %v1997_v26 = vpop.f32.mrb[107].mxu1 }
 0x2d0   : > { %2155 = vst [vmem:[#allocation2 + $0x1a0] sm:$0xff] %v2091_v24  ;;  %v2092_v27 = vadd.f32 %v1996_v25, %v426_v21  ;;  %v435_v21 = vld [vmem:[#allocation2 + $0x1f0] sm:$0xff] }
 0x2d2   : > { %2156 = vst [vmem:[#allocation2 + $0x1a8] sm:$0xff] %v2092_v27  ;;  %v436_v27 = vld [vmem:[#allocation2 + $0x1f8] sm:$0xff] }
 0x2d3   : > { %v1711_v28 = vpop.f32.mrb[108].mxu0  ;;  %v2000_v30 = vpop.f32.mrb[108].mxu1 }
 0x2d4   : > { %v1713_v31 = vpop.f32.mrb[109].mxu0  ;;  %v2001_v32 = vadd.f32 %v2000_v30, %v1711_v28  ;;  %v2002_v33 = vpop.f32.mrb[109].mxu1 }
 0x2d5   : > { %v1714_v34 = vpop.f32.mrb[110].mxu0  ;;  %v2003_v36 = vpop.f32.mrb[110].mxu1 }
 0x2d6   : > { %v1716_v37 = vpop.f32.mrb[111].mxu0  ;;  %v2093_v38 = vadd.f32 %v2001_v32, %v427_v29  ;;  %v2004_v39 = vadd.f32 %v2003_v36, %v1714_v34  ;;  %v2005_v40 = vpop.f32.mrb[111].mxu1  ;;  %v4257_v34 = vld [vmem:[#allocation9] sm:$0xff] (!%p3399_p10)   ;;  %v4259_v36 = vld [vmem:[#allocation9 + $0x10] sm:$0xff] (!%p3399_p10)  }
 0x2d7   : > { %3776 = vmatprep.subr.bf16.mxu0 (!%p3399_p10), %v4257_v34  ;;  %3856 = vmatprep.subr.bf16.mxu1 (!%p3399_p10), %v4257_v34  ;;  %v4260_v37 = vld [vmem:[#allocation9 + $0x18] sm:$0xff] (!%p3399_p10)  }
 0x2d8   : > { %2157 = vst [vmem:[#allocation2 + $0x1b0] sm:$0xff] %v2093_v38  ;;  %v2094_v41 = vadd.f32 %v2004_v39, %v428_v35  ;;  %v4258_v35 = vld [vmem:[#allocation9 + $0x8] sm:$0xff] (!%p3399_p10)   ;;  %3777 = vmatpush3.bf16.msra.mxu0 (!%p3399_p10), %v4257_v34  ;;  %3864 = vmatpush3.bf16.msra.mxu1 (!%p3399_p10), %v4257_v34  ;;  %v2171_v38 = vld [vmem:[#allocation2] sm:$0xff] (!%p3399_p10) }
 0x2d9   : > { %3778 = vmatprep.subr.bf16.mxu0 (!%p3399_p10), %v4258_v35  ;;  %3857 = vmatprep.subr.bf16.mxu1 (!%p3399_p10), %v4258_v35  ;;  %v2172_v39 = vld [vmem:[#allocation2 + $0x8] sm:$0xff] (!%p3399_p10)  ;;  %v5170_v40 = vld [vmem:[#allocation8] ss:$0 sm:$0xff] (!%p3399_p10) }
 0x2da   : > { %2158 = vst [vmem:[#allocation2 + $0x1b8] sm:$0xff] %v2094_v41  ;;  %v2242_v41 = vadd.f32 (!%p3399_p10), %v5170_v40, %v2171_v38 }
 0x2db   : > { %v1719_v42 = vpop.f32.mrb[112].mxu0  ;;  %v2008_v44 = vpop.f32.mrb[112].mxu1 }
 0x2dc   : > { %v1721_v45 = vpop.f32.mrb[113].mxu0  ;;  %v2009_v46 = vadd.f32 %v2008_v44, %v1719_v42  ;;  %v2010_v47 = vpop.f32.mrb[113].mxu1  ;;  %3779 = vmatpush3.bf16.msra.mxu0 (!%p3399_p10), %v4258_v35  ;;  %3865 = vmatpush3.bf16.msra.mxu1 (!%p3399_p10), %v4258_v35  ;;  %v2243_v42 = vadd.f32 (!%p3399_p10), %v5170_v40, %v2172_v39  ;;  %v2204_v44 = vld [vmem:[#allocation2 + $0x108] sm:$0xff] (!%p3399_p10)  ;;  %v2181_v39 = vld [vmem:[#allocation2 + $0x50] sm:$0xff] (!%p3399_p10) }
 0x2dd   : > { %v1722_v48 = vpop.f32.mrb[114].mxu0  ;;  %v2011_v50 = vpop.f32.mrb[114].mxu1  ;;  %3780 = vmatprep.subr.bf16.mxu0 (!%p3399_p10), %v4259_v36  ;;  %3858 = vmatprep.subr.bf16.mxu1 (!%p3399_p10), %v4259_v36  ;;  %v2306_v47 = vmax.f32 (!%p3399_p10), %v2242_v41, 0.0  ;;  %v2182_v41 = vld [vmem:[#allocation2 + $0x58] sm:$0xff] (!%p3399_p10) }
 0x2de   : > { %v1724_v51 = vpop.f32.mrb[115].mxu0  ;;  %v2095_v52 = vadd.f32 %v2009_v46, %v429_v43  ;;  %v2012_v53 = vadd.f32 %v2011_v50, %v1722_v48  ;;  %v2013_v54 = vpop.f32.mrb[115].mxu1  ;;  %v2203_v43 = vld [vmem:[#allocation2 + $0x100] sm:$0xff] (!%p3399_p10)  ;;  %v2275_v46 = vadd.f32 (!%p3399_p10), %v5170_v40, %v2204_v44  ;;  %v2307_v48 = vmax.f32 (!%p3399_p10), %v2243_v42, 0.0 }
 0x2df   : > { %v2274_v45 = vadd.f32 (!%p3399_p10), %v5170_v40, %v2203_v43  ;;  %v4262_v54 = vld [vmem:[#allocation9 + $0x28] sm:$0xff] (!%p3399_p10)  }
 0x2e0   : > { %2159 = vst [vmem:[#allocation2 + $0x1c0] sm:$0xff] %v2095_v52  ;;  %v2096_v55 = vadd.f32 %v2012_v53, %v430_v49  ;;  %3781 = vmatpush3.bf16.msra.mxu0 (!%p3399_p10), %v4259_v36  ;;  %3866 = vmatpush3.bf16.msra.mxu1 (!%p3399_p10), %v4259_v36  ;;  %v4261_v49 = vld [vmem:[#allocation9 + $0x20] sm:$0xff] (!%p3399_p10)   ;;  %v2339_v51 = vmax.f32 (!%p3399_p10), %v2275_v46, 0.0  ;;  %v2370_v52 = vpack.c.bf16 (!%p3399_p10), %v2307_v48, %v2306_v47  ;;  %v2213_v46 = vld [vmem:[#allocation2 + $0x150] sm:$0xff] (!%p3399_p10)  ;;  %v2214_v47 = vld [vmem:[#allocation2 + $0x158] sm:$0xff] (!%p3399_p10) }
 0x2e1   : > { %3782 = vmatprep.subr.bf16.mxu0 (!%p3399_p10), %v4260_v37  ;;  %3859 = vmatprep.subr.bf16.mxu1 (!%p3399_p10), %v4260_v37  ;;  %v2338_v50 = vmax.f32 (!%p3399_p10), %v2274_v45, 0.0 }
 0x2e2   : > { %2160 = vst [vmem:[#allocation2 + $0x1c8] sm:$0xff] %v2096_v55  ;;  %3792 = vmatprep.mubr.bf16.mxu0 (!%p3399_p10), %v2370_v52  ;;  %v2173_v55 = vld [vmem:[#allocation2 + $0x10] sm:$0xff] (!%p3399_p10)  ;;  %v2215_v52 = vld [vmem:[#allocation2 + $0x160] sm:$0xff] (!%p3399_p10) }
 0x2e3   : > { %v1727_v56 = vpop.f32.mrb[116].mxu0  ;;  %v2016_v58 = vpop.f32.mrb[116].mxu1  ;;  %v2386_v53 = vpack.c.bf16 (!%p3399_p10), %v2339_v51, %v2338_v50  ;;  %v2183_v50 = vld [vmem:[#allocation2 + $0x60] sm:$0xff] (!%p3399_p10)  ;;  %v2184_v51 = vld [vmem:[#allocation2 + $0x68] sm:$0xff] (!%p3399_p10) }
 0x2e4   : > { %v1729_v59 = vpop.f32.mrb[117].mxu0  ;;  %v2017_v60 = vadd.f32 %v2016_v58, %v1727_v56  ;;  %v2018_v61 = vpop.f32.mrb[117].mxu1  ;;  %3783 = vmatpush3.bf16.msra.mxu0 (!%p3399_p10), %v4260_v37  ;;  %3867 = vmatpush3.bf16.msra.mxu1 (!%p3399_p10), %v4260_v37  ;;  %v2174_v56 = vld [vmem:[#allocation2 + $0x18] sm:$0xff] (!%p3399_p10) }
 0x2e5   : > { %v1730_v62 = vpop.f32.mrb[118].mxu0  ;;  %v2019_v0 = vpop.f32.mrb[118].mxu1  ;;  %3784 = vmatprep.subr.bf16.mxu0 (!%p3399_p10), %v4261_v49  ;;  %3860 = vmatprep.subr.bf16.mxu1 (!%p3399_p10), %v4261_v49  ;;  %v2206_v58 = vld [vmem:[#allocation2 + $0x118] sm:$0xff] (!%p3399_p10)  ;;  %v2175_v59 = vld [vmem:[#allocation2 + $0x20] sm:$0xff] (!%p3399_p10) }
 0x2e6   : > { %v1732_v1 = vpop.f32.mrb[119].mxu0  ;;  %v2097_v2 = vadd.f32 %v2017_v60, %v431_v57  ;;  %v2020_v3 = vadd.f32 %v2019_v0, %v1730_v62  ;;  %v2021_v4 = vpop.f32.mrb[119].mxu1  ;;  %3824 = vmatprep.mubr.bf16.mxu1 (!%p3399_p10), %v2386_v53  ;;  %v2205_v57 = vld [vmem:[#allocation2 + $0x110] sm:$0xff] (!%p3399_p10)  ;;  %v2176_v60 = vld [vmem:[#allocation2 + $0x28] sm:$0xff] (!%p3399_p10)  ;;  %v2244_v62 = vadd.f32 (!%p3399_p10), %v5170_v40, %v2173_v55  ;;  %v2207_v0 = vld [vmem:[#allocation2 + $0x120] sm:$0xff] (!%p3399_p10)  ;;  %v2253_v55 = vadd.f32 (!%p3399_p10), %v5170_v40, %v2182_v41 }
 0x2e7   : > { %v4263_v61 = vld [vmem:[#allocation9 + $0x30] sm:$0xff] (!%p3399_p10)   ;;  %v2208_v1 = vld [vmem:[#allocation2 + $0x128] sm:$0xff] (!%p3399_p10)  ;;  %v2246_v4 = vadd.f32 (!%p3399_p10), %v5170_v40, %v2175_v59 }
 0x2e8   : > { %2161 = vst [vmem:[#allocation2 + $0x1d0] sm:$0xff] %v2097_v2  ;;  %v2098_v5 = vadd.f32 %v2020_v3, %v432_v63  ;;  %3785 = vmatpush3.bf16.msra.mxu0 (!%p3399_p10), %v4261_v49  ;;  %3868 = vmatpush3.bf16.msra.mxu1 (!%p3399_p10), %v4261_v49  ;;  %v2245_v63 = vadd.f32 (!%p3399_p10), %v5170_v40, %v2174_v56  ;;  %v2216_v53 = vld [vmem:[#allocation2 + $0x168] sm:$0xff] (!%p3399_p10) }
 0x2e9   : > { %3786 = vmatprep.subr.bf16.mxu0 (!%p3399_p10), %v4262_v54  ;;  %3861 = vmatprep.subr.bf16.mxu1 (!%p3399_p10), %v4262_v54  ;;  %v2276_v2 = vadd.f32 (!%p3399_p10), %v5170_v40, %v2205_v57  ;;  %v2277_v3 = vadd.f32 (!%p3399_p10), %v5170_v40, %v2206_v58  ;;  %v2284_v56 = vadd.f32 (!%p3399_p10), %v5170_v40, %v2213_v46  ;;  %v2224_v46 = vld [vmem:[#allocation2 + $0x1a8] sm:$0xff] (!%p3399_p10) }
 0x2ea   : > { %2162 = vst [vmem:[#allocation2 + $0x1d8] sm:$0xff] %v2098_v5  ;;  %v2247_v5 = vadd.f32 (!%p3399_p10), %v5170_v40, %v2176_v60  ;;  %v2285_v57 = vadd.f32 (!%p3399_p10), %v5170_v40, %v2214_v47 }
 0x2eb   : > { %v1735_v6 = vpop.f32.mrb[120].mxu0  ;;  %v2024_v8 = vpop.f32.mrb[120].mxu1 }
 0x2ec   : > { %v1737_v9 = vpop.f32.mrb[121].mxu0  ;;  %v2025_v10 = vadd.f32 %v2024_v8, %v1735_v6  ;;  %v2026_v11 = vpop.f32.mrb[121].mxu1  ;;  %3787 = vmatpush3.bf16.msra.mxu0 (!%p3399_p10), %v4262_v54  ;;  %3869 = vmatpush3.bf16.msra.mxu1 (!%p3399_p10), %v4262_v54  ;;  %v2278_v6 = vadd.f32 (!%p3399_p10), %v5170_v40, %v2207_v0  ;;  %v4264_v8 = vld [vmem:[#allocation9 + $0x38] sm:$0xff] (!%p3399_p10)   ;;  %v2252_v54 = vadd.f32 (!%p3399_p10), %v5170_v40, %v2181_v39 }
 0x2ed   : > { %v1738_v12 = vpop.f32.mrb[122].mxu0  ;;  %v2027_v14 = vpop.f32.mrb[122].mxu1  ;;  %3788 = vmatprep.subr.bf16.mxu0 (!%p3399_p10), %v4263_v61  ;;  %3862 = vmatprep.subr.bf16.mxu1 (!%p3399_p10), %v4263_v61  ;;  %v2308_v9 = vmax.f32 (!%p3399_p10), %v2244_v62, 0.0  ;;  %v2340_v11 = vmax.f32 (!%p3399_p10), %v2276_v2, 0.0  ;;  %v2286_v0 = vadd.f32 (!%p3399_p10), %v5170_v40, %v2215_v52  ;;  %v2222_v39 = vld [vmem:[#allocation2 + $0x198] sm:$0xff] (!%p3399_p10) }
 0x2ee   : > { %v1740_v15 = vpop.f32.mrb[123].mxu0  ;;  %v2099_v16 = vadd.f32 %v2025_v10, %v433_v7  ;;  %v2028_v17 = vadd.f32 %v2027_v14, %v1738_v12  ;;  %v2029_v18 = vpop.f32.mrb[123].mxu1  ;;  %v2279_v7 = vadd.f32 (!%p3399_p10), %v5170_v40, %v2208_v1  ;;  %v2309_v10 = vmax.f32 (!%p3399_p10), %v2245_v63, 0.0 }
 0x2ef   : > { %v2341_v12 = vmax.f32 (!%p3399_p10), %v2277_v3, 0.0  ;;  %v2311_v14 = vmax.f32 (!%p3399_p10), %v2247_v5, 0.0  ;;  %v2177_v15 = vld [vmem:[#allocation2 + $0x30] sm:$0xff] (!%p3399_p10)  ;;  %v2342_v18 = vmax.f32 (!%p3399_p10), %v2278_v6, 0.0  ;;  %v2255_v63 = vadd.f32 (!%p3399_p10), %v5170_v40, %v2184_v51 }
 0x2f0   : > { %2163 = vst [vmem:[#allocation2 + $0x1e0] sm:$0xff] %v2099_v16  ;;  %v2100_v19 = vadd.f32 %v2028_v17, %v434_v13  ;;  %v2310_v13 = vmax.f32 (!%p3399_p10), %v2246_v4, 0.0  ;;  %v2178_v16 = vld [vmem:[#allocation2 + $0x38] sm:$0xff] (!%p3399_p10)  ;;  %v2209_v17 = vld [vmem:[#allocation2 + $0x130] sm:$0xff] (!%p3399_p10)  ;;  %3789 = vmatpush3.bf16.msra.mxu0 (!%p3399_p10), %v4263_v61  ;;  %3870 = vmatpush3.bf16.msra.mxu1 (!%p3399_p10), %v4263_v61  ;;  %v2254_v61 = vadd.f32 (!%p3399_p10), %v5170_v40, %v2183_v50  ;;  %v2316_v2 = vmax.f32 (!%p3399_p10), %v2252_v54, 0.0 }
 0x2f1   : > { %3790 = vmatprep.subr.bf16.mxu0 (!%p3399_p10), %v4264_v8  ;;  %3863 = vmatprep.subr.bf16.mxu1 (!%p3399_p10), %v4264_v8  ;;  %v2287_v1 = vadd.f32 (!%p3399_p10), %v5170_v40, %v2216_v53  ;;  %v2317_v3 = vmax.f32 (!%p3399_p10), %v2253_v55, 0.0  ;;  %v2348_v4 = vmax.f32 (!%p3399_p10), %v2284_v56, 0.0  ;;  %v2349_v5 = vmax.f32 (!%p3399_p10), %v2285_v57, 0.0  ;;  %v2185_v6 = vld [vmem:[#allocation2 + $0x70] sm:$0xff] (!%p3399_p10) }
 0x2f2   : > { %2164 = vst [vmem:[#allocation2 + $0x1e8] sm:$0xff] %v2100_v19  ;;  %v2343_v19 = vmax.f32 (!%p3399_p10), %v2279_v7, 0.0  ;;  %v2186_v7 = vld [vmem:[#allocation2 + $0x78] sm:$0xff] (!%p3399_p10)  ;;  %v2293_v50 = vadd.f32 (!%p3399_p10), %v5170_v40, %v2222_v39 }
 0x2f3   : > { %v1743_v20 = vpop.f32.mrb[124].mxu0  ;;  %v2032_v22 = vpop.f32.mrb[124].mxu1 }
 0x2f4   : > { %v1745_v23 = vpop.f32.mrb[125].mxu0  ;;  %v2033_v24 = vadd.f32 %v2032_v22, %v1743_v20  ;;  %v2034_v25 = vpop.f32.mrb[125].mxu1  ;;  %2170 = sbr.rel (%p3399_p10) target bundleno = 1035 (0x40b), region = 60  ;;  %v2210_v20 = vld [vmem:[#allocation2 + $0x138] sm:$0xff] (!%p3399_p10)  ;;  %v2180_v22 = vld [vmem:[#allocation2 + $0x48] sm:$0xff] (!%p3399_p10)  ;;  %3791 = vmatpush3.bf16.msra.mxu0 (!%p3399_p10), %v4264_v8  ;;  %3871 = vmatpush3.bf16.msra.mxu1 (!%p3399_p10), %v4264_v8  ;;  %v2388_v34 = vpack.c.bf16 (!%p3399_p10), %v2343_v19, %v2342_v18  ;;  %v2217_v8 = vld [vmem:[#allocation2 + $0x170] sm:$0xff] (!%p3399_p10)  ;;  %v2375_v18 = vpack.c.bf16 (!%p3399_p10), %v2317_v3, %v2316_v2 }
 0x2f5   : > { %v1746_v26 = vpop.f32.mrb[126].mxu0  ;;  %v2035_v28 = vpop.f32.mrb[126].mxu1  ;;  %v2371_v23 = vpack.c.bf16 (!%p3399_p10), %v2309_v10, %v2308_v9  ;;  %v2212_v25 = vld [vmem:[#allocation2 + $0x148] sm:$0xff] (!%p3399_p10)  ;;  %v2218_v9 = vld [vmem:[#allocation2 + $0x178] sm:$0xff] (!%p3399_p10)  ;;  %v2318_v10 = vmax.f32 (!%p3399_p10), %v2254_v61, 0.0  ;;  %v2391_v19 = vpack.c.bf16 (!%p3399_p10), %v2349_v5, %v2348_v4 }
 0x2f6   : > { %v1748_v29 = vpop.f32.mrb[127].mxu0  ;;  %v2101_v30 = vadd.f32 %v2033_v24, %v435_v21  ;;  %v2036_v31 = vadd.f32 %v2035_v28, %v1746_v26  ;;  %v2037_v32 = vpop.f32.mrb[127].mxu1  ;;  %v2179_v21 = vld [vmem:[#allocation2 + $0x40] sm:$0xff] (!%p3399_p10)  ;;  %v2387_v26 = vpack.c.bf16 (!%p3399_p10), %v2341_v12, %v2340_v11  ;;  %v2249_v28 = vadd.f32 (!%p3399_p10), %v5170_v40, %v2178_v16  ;;  %v2226_v2 = vld [vmem:[#allocation2 + $0x1b8] sm:$0xff] (!%p3399_p10) }
 0x2f7   : > { %v2211_v24 = vld [vmem:[#allocation2 + $0x140] sm:$0xff] (!%p3399_p10)  ;;  %v2280_v29 = vadd.f32 (!%p3399_p10), %v5170_v40, %v2209_v17  ;;  %v2250_v32 = vadd.f32 (!%p3399_p10), %v5170_v40, %v2179_v21  ;;  %v2283_v36 = vadd.f32 (!%p3399_p10), %v5170_v40, %v2212_v25  ;;  %3793 = vmatmul.mubr.bf16.vlgmr.msra.gmra.mrb[0].mxu0 (!%p3399_p10), %v2371_v23  ;;  %v2319_v11 = vmax.f32 (!%p3399_p10), %v2255_v63, 0.0  ;;  %v2220_v17 = vld [vmem:[#allocation2 + $0x188] sm:$0xff] (!%p3399_p10)  ;;  %v2193_v63 = vld [vmem:[#allocation2 + $0xb0] sm:$0xff] (!%p3399_p10) }
 0x2f8   : > { %2165 = vst [vmem:[#allocation2 + $0x1f0] sm:$0xff] %v2101_v30  ;;  %v2102_v33 = vadd.f32 %v2036_v31, %v436_v27  ;;  %v2248_v27 = vadd.f32 (!%p3399_p10), %v5170_v40, %v2177_v15  ;;  %v2372_v30 = vpack.c.bf16 (!%p3399_p10), %v2311_v14, %v2310_v13  ;;  %v2281_v31 = vadd.f32 (!%p3399_p10), %v5170_v40, %v2210_v20  ;;  %v2187_v14 = vld [vmem:[#allocation2 + $0x80] sm:$0xff] (!%p3399_p10)  ;;  %v2188_v15 = vld [vmem:[#allocation2 + $0x88] sm:$0xff] (!%p3399_p10) }
 0x2f9   : > { %v2282_v35 = vadd.f32 (!%p3399_p10), %v5170_v40, %v2211_v24  ;;  %v2313_v38 = vmax.f32 (!%p3399_p10), %v2249_v28, 0.0  ;;  %3825 = vmatmul.mubr.bf16.vlgmr.msra.gmra.mrb[0].mxu1 (!%p3399_p10), %v2387_v26  ;;  %v2344_v42 = vmax.f32 (!%p3399_p10), %v2280_v29, 0.0  ;;  %v2314_v44 = vmax.f32 (!%p3399_p10), %v2250_v32, 0.0  ;;  %v2219_v16 = vld [vmem:[#allocation2 + $0x180] sm:$0xff] (!%p3399_p10)  ;;  %v2189_v32 = vld [vmem:[#allocation2 + $0x90] sm:$0xff] (!%p3399_p10) }
 0x2fa   : > { %2166 = vst [vmem:[#allocation2 + $0x1f8] sm:$0xff] %v2102_v33  ;;  %v2251_v33 = vadd.f32 (!%p3399_p10), %v5170_v40, %v2180_v22  ;;  %v2312_v37 = vmax.f32 (!%p3399_p10), %v2248_v27, 0.0  ;;  %v2345_v43 = vmax.f32 (!%p3399_p10), %v2281_v31, 0.0  ;;  %3796 = vmatprep.mubr.bf16.mxu0 (!%p3399_p10), %v2372_v30  ;;  %3828 = vmatprep.mubr.bf16.mxu1 (!%p3399_p10), %v2388_v34  ;;  %v2347_v49 = vmax.f32 (!%p3399_p10), %v2283_v36, 0.0 }
 0x2fb   : > { %v2346_v48 = vmax.f32 %v2282_v35, 0.0  ;;  %v2350_v12 = vmax.f32 %v2286_v0, 0.0  ;;  %v2351_v13 = vmax.f32 %v2287_v1, 0.0  ;;  %v2256_v20 = vadd.f32 %v5170_v40, %v2185_v6  ;;  %v2194_v0 = vld [vmem:[#allocation2 + $0xb8] sm:$0xff]  ;;  %v2225_v1 = vld [vmem:[#allocation2 + $0x1b0] sm:$0xff] }
 0x2fc   : > { %v2315_v45 = vmax.f32 %v2251_v33, 0.0  ;;  %v2373_v58 = vpack.c.bf16 %v2313_v38, %v2312_v37  ;;  %v2389_v59 = vpack.c.bf16 %v2345_v43, %v2344_v42  ;;  %v2257_v21 = vadd.f32 %v5170_v40, %v2186_v7  ;;  %v2190_v33 = vld [vmem:[#allocation2 + $0x98] sm:$0xff]  ;;  %v2221_v38 = vld [vmem:[#allocation2 + $0x190] sm:$0xff]  ;;  %v2191_v43 = vld [vmem:[#allocation2 + $0xa0] sm:$0xff] }
 0x2fd   : > { %v2390_v62 = vpack.c.bf16 %v2347_v49, %v2346_v48  ;;  %v2288_v22 = vadd.f32 %v5170_v40, %v2217_v8  ;;  %v2289_v23 = vadd.f32 %v5170_v40, %v2218_v9  ;;  %v2258_v24 = vadd.f32 %v5170_v40, %v2187_v14  ;;  %v2195_v7 = vld [vmem:[#allocation2 + $0xc0] sm:$0xff]  ;;  %v2196_v8 = vld [vmem:[#allocation2 + $0xc8] sm:$0xff] }
 0x2fe   : > { %v2374_v60 = vpack.c.bf16 %v2315_v45, %v2314_v44  ;;  %v2259_v25 = vadd.f32 %v5170_v40, %v2188_v15  ;;  %v2376_v26 = vpack.c.bf16 %v2319_v11, %v2318_v10  ;;  %v2392_v27 = vpack.c.bf16 %v2351_v13, %v2350_v12  ;;  %v2192_v44 = vld [vmem:[#allocation2 + $0xa8] sm:$0xff]  ;;  %v2223_v45 = vld [vmem:[#allocation2 + $0x1a0] sm:$0xff] }
 0x2ff   : > { %3797 = vmatmul.mubr.bf16.gmra.mrb[4].mxu0 %v2373_v58  ;;  %v2290_v28 = vadd.f32 %v5170_v40, %v2219_v16  ;;  %v2291_v29 = vadd.f32 %v5170_v40, %v2220_v17  ;;  %v2320_v30 = vmax.f32 %v2256_v20, 0.0  ;;  %v2321_v31 = vmax.f32 %v2257_v21, 0.0  ;;  %v2227_v9 = vld [vmem:[#allocation2 + $0x1c0] sm:$0xff]  ;;  %v2228_v10 = vld [vmem:[#allocation2 + $0x1c8] sm:$0xff] }
 0x300   : > { %3800 = vmatprep.mubr.bf16.mxu0 %v2374_v60  ;;  %v2352_v34 = vmax.f32 %v2288_v22, 0.0  ;;  %v2353_v35 = vmax.f32 %v2289_v23, 0.0  ;;  %v2322_v36 = vmax.f32 %v2258_v24, 0.0  ;;  %v2323_v37 = vmax.f32 %v2259_v25, 0.0  ;;  %v2197_v25 = vld [vmem:[#allocation2 + $0xd0] sm:$0xff] }
 0x301   : > { %3829 = vmatmul.mubr.bf16.gmra.mrb[4].mxu1 %v2389_v59  ;;  %v2354_v41 = vmax.f32 %v2290_v28, 0.0  ;;  %v2355_v42 = vmax.f32 %v2291_v29, 0.0  ;;  %v2260_v47 = vadd.f32 %v5170_v40, %v2189_v32  ;;  %v2261_v48 = vadd.f32 %v5170_v40, %v2190_v33  ;;  %v2230_v32 = vld [vmem:[#allocation2 + $0x1d8] sm:$0xff] }
 0x302   : > { %3832 = vmatprep.mubr.bf16.mxu1 %v2390_v62  ;;  %v2292_v49 = vadd.f32 %v5170_v40, %v2221_v38  ;;  %v2377_v51 = vpack.c.bf16 %v2321_v31, %v2320_v30  ;;  %v2393_v52 = vpack.c.bf16 %v2353_v35, %v2352_v34  ;;  %v2378_v53 = vpack.c.bf16 %v2323_v37, %v2322_v36  ;;  %v2229_v31 = vld [vmem:[#allocation2 + $0x1d0] sm:$0xff]  ;;  %v2199_v35 = vld [vmem:[#allocation2 + $0xe0] sm:$0xff]  ;;  %v2200_v36 = vld [vmem:[#allocation2 + $0xe8] sm:$0xff] }
 0x303   : > { %v2262_v54 = vadd.f32 %v5170_v40, %v2191_v43  ;;  %v2394_v55 = vpack.c.bf16 %v2355_v42, %v2354_v41  ;;  %v2263_v56 = vadd.f32 %v5170_v40, %v2192_v44  ;;  %v2294_v57 = vadd.f32 %v5170_v40, %v2223_v45  ;;  %v2231_v37 = vld [vmem:[#allocation2 + $0x1e0] sm:$0xff]  ;;  %v2232_v38 = vld [vmem:[#allocation2 + $0x1e8] sm:$0xff] }
 0x304   : > { %v2295_v58 = vadd.f32 %v5170_v40, %v2224_v46  ;;  %v2324_v59 = vmax.f32 %v2260_v47, 0.0  ;;  %v2325_v60 = vmax.f32 %v2261_v48, 0.0  ;;  %v2356_v61 = vmax.f32 %v2292_v49, 0.0 }
 0x305   : > { %v2357_v62 = vmax.f32 %v2293_v50, 0.0  ;;  %v2326_v3 = vmax.f32 %v2262_v54, 0.0  ;;  %v2327_v4 = vmax.f32 %v2263_v56, 0.0  ;;  %v2358_v5 = vmax.f32 %v2294_v57, 0.0  ;;  %v2201_v56 = vld [vmem:[#allocation2 + $0xf0] sm:$0xff]  ;;  %v2202_v57 = vld [vmem:[#allocation2 + $0xf8] sm:$0xff] }
 0x306   : > { %v2359_v6 = vmax.f32 %v2295_v58, 0.0  ;;  %v2379_v11 = vpack.c.bf16 %v2325_v60, %v2324_v59  ;;  %v2264_v13 = vadd.f32 %v5170_v40, %v2193_v63  ;;  %v2265_v14 = vadd.f32 %v5170_v40, %v2194_v0  ;;  %v2234_v63 = vld [vmem:[#allocation2 + $0x1f8] sm:$0xff] }
 0x307   : > { %3801 = vmatmul.mubr.bf16.gmra.mrb[8].mxu0 %v2375_v18  ;;  %v2395_v12 = vpack.c.bf16 %v2357_v62, %v2356_v61  ;;  %v2296_v15 = vadd.f32 %v5170_v40, %v2225_v1  ;;  %v2297_v16 = vadd.f32 %v5170_v40, %v2226_v2  ;;  %v2266_v17 = vadd.f32 %v5170_v40, %v2195_v7  ;;  %v2233_v62 = vld [vmem:[#allocation2 + $0x1f0] sm:$0xff] }
 0x308   : > { %3804 = vmatprep.mubr.bf16.mxu0 %v2376_v26  ;;  %v2267_v18 = vadd.f32 %v5170_v40, %v2196_v8  ;;  %v2396_v20 = vpack.c.bf16 %v2359_v6, %v2358_v5  ;;  %v2298_v21 = vadd.f32 %v5170_v40, %v2227_v9  ;;  %v2299_v22 = vadd.f32 %v5170_v40, %v2228_v10  ;;  %v2198_v26 = vld [vmem:[#allocation2 + $0xd8] sm:$0xff] }
 0x309   : > { %3833 = vmatmul.mubr.bf16.gmra.mrb[8].mxu1 %v2391_v19  ;;  %v2380_v19 = vpack.c.bf16 %v2327_v4, %v2326_v3  ;;  %v2328_v23 = vmax.f32 %v2264_v13, 0.0  ;;  %v2329_v24 = vmax.f32 %v2265_v14, 0.0  ;;  %v2361_v28 = vmax.f32 %v2297_v16, 0.0 }
 0x30a   : > { %3836 = vmatprep.mubr.bf16.mxu1 %v2392_v27  ;;  %v2360_v27 = vmax.f32 %v2296_v15, 0.0  ;;  %v2330_v29 = vmax.f32 %v2266_v17, 0.0  ;;  %v2331_v30 = vmax.f32 %v2267_v18, 0.0  ;;  %v2362_v33 = vmax.f32 %v2298_v21, 0.0 }
 0x30b   : > { %v2363_v34 = vmax.f32 %v2299_v22, 0.0  ;;  %v2268_v39 = vadd.f32 %v5170_v40, %v2197_v25  ;;  %v2269_v41 = vadd.f32 %v5170_v40, %v2198_v26  ;;  %v2300_v42 = vadd.f32 %v5170_v40, %v2229_v31 }
 0x30c   : > { %v2301_v43 = vadd.f32 %v5170_v40, %v2230_v32  ;;  %v2381_v44 = vpack.c.bf16 %v2329_v24, %v2328_v23  ;;  %v2397_v45 = vpack.c.bf16 %v2361_v28, %v2360_v27  ;;  %v2382_v46 = vpack.c.bf16 %v2331_v30, %v2330_v29 }
 0x30d   : > { %v2270_v47 = vadd.f32 %v5170_v40, %v2199_v35  ;;  %v2398_v48 = vpack.c.bf16 %v2363_v34, %v2362_v33  ;;  %v2271_v49 = vadd.f32 %v5170_v40, %v2200_v36  ;;  %v2302_v50 = vadd.f32 %v5170_v40, %v2231_v37 }
 0x30e   : > { %v2364_v54 = vmax.f32 %v2300_v42, 0.0  ;;  %v2272_v2 = vadd.f32 %v5170_v40, %v2201_v56  ;;  %v2273_v3 = vadd.f32 %v5170_v40, %v2202_v57  ;;  %v2304_v4 = vadd.f32 %v5170_v40, %v2233_v62 }
 0x30f   : > { %3805 = vmatmul.mubr.bf16.gmra.mrb[12].mxu0 %v2377_v51  ;;  %v2303_v51 = vadd.f32 %v5170_v40, %v2232_v38  ;;  %v2334_v58 = vmax.f32 %v2270_v47, 0.0  ;;  %v2335_v59 = vmax.f32 %v2271_v49, 0.0  ;;  %v2366_v60 = vmax.f32 %v2302_v50, 0.0 }
 0x310   : > { %3808 = vmatprep.mubr.bf16.mxu0 %v2378_v53  ;;  %v2333_v53 = vmax.f32 %v2269_v41, 0.0  ;;  %v2305_v5 = vadd.f32 %v5170_v40, %v2234_v63  ;;  %v2336_v8 = vmax.f32 %v2272_v2, 0.0  ;;  %v2337_v9 = vmax.f32 %v2273_v3, 0.0 }
 0x311   : > { %3837 = vmatmul.mubr.bf16.gmra.mrb[12].mxu1 %v2393_v52  ;;  %v2332_v52 = vmax.f32 %v2268_v39, 0.0  ;;  %v2367_v61 = vmax.f32 %v2303_v51, 0.0  ;;  %v2384_v6 = vpack.c.bf16 %v2335_v59, %v2334_v58  ;;  %v2368_v10 = vmax.f32 %v2304_v4, 0.0 }
 0x312   : > { %3840 = vmatprep.mubr.bf16.mxu1 %v2394_v55  ;;  %v2365_v55 = vmax.f32 %v2301_v43, 0.0 }
 0x313   : > { %v2383_v0 = vpack.c.bf16 %v2333_v53, %v2332_v52  ;;  %v2400_v7 = vpack.c.bf16 %v2367_v61, %v2366_v60 }
 0x314   : > { %v2399_v1 = vpack.c.bf16 %v2365_v55, %v2364_v54 }
 0x317   : > { %3809 = vmatmul.mubr.bf16.gmra.mrb[16].mxu0 %v2379_v11  ;;  %v2369_v11 = vmax.f32 %v2305_v5, 0.0 }
 0x318   : > { %3812 = vmatprep.mubr.bf16.mxu0 %v2380_v19 }
 0x319   : > { %3841 = vmatmul.mubr.bf16.gmra.mrb[16].mxu1 %v2395_v12  ;;  %v2385_v12 = vpack.c.bf16 %v2337_v9, %v2336_v8  ;;  %v2401_v13 = vpack.c.bf16 %v2369_v11, %v2368_v10 }
 0x31a   : > { %3844 = vmatprep.mubr.bf16.mxu1 %v2396_v20 }
 0x31f   : > { %3813 = vmatmul.mubr.bf16.gmra.mrb[20].mxu0 %v2381_v44 }
 0x320   : > { %3816 = vmatprep.mubr.bf16.mxu0 %v2382_v46 }
 0x321   : > { %3845 = vmatmul.mubr.bf16.gmra.mrb[20].mxu1 %v2397_v45 }
 0x322   : > { %3848 = vmatprep.mubr.bf16.mxu1 %v2398_v48 }
 0x327   : > { %3817 = vmatmul.mubr.bf16.gmra.mrb[24].mxu0 %v2383_v0 }
 0x328   : > { %3820 = vmatprep.mubr.bf16.mxu0 %v2384_v6 }
 0x329   : > { %3849 = vmatmul.mubr.bf16.gmra.mrb[24].mxu1 %v2399_v1 }
 0x32a   : > { %3852 = vmatprep.mubr.bf16.mxu1 %v2400_v7 }
 0x32f   : > { %3821 = vmatmul.mubr.bf16.gmra.mrb[28].mxu0 %v2385_v12 }
 0x331   : > { %3853 = vmatmul.mubr.bf16.gmra.mrb[28].mxu1 %v2401_v13 }
 0x3ca   : > { %v3794_v14 = vpop.f32.mrb[0].mxu0 }
 0x3cb   : > { %v2500_v15 = vpop.f32.mrb[1].mxu0 }
 0x3cc   : > { %v3826_v40 = vpop.f32.mrb[0].mxu1  ;;  %v3795_v17 = vpop.f32.mrb[2].mxu0 }
 0x3cd   : > { %v2628_v16 = vpop.f32.mrb[1].mxu1  ;;  %v3553_v19 = vpack.c.bf16 %v3795_v17, %v3794_v14  ;;  %v2503_v21 = vpop.f32.mrb[3].mxu0 }
 0x3ce   : > { %v3827_v18 = vpop.f32.mrb[2].mxu1  ;;  %v3548_v23 = vpack.c.bf16 %v2503_v21, %v2500_v15 }
 0x3cf   : > { %v3633_v20 = vpack.c.bf16 %v3827_v18, %v3826_v40  ;;  %v2631_v22 = vpop.f32.mrb[3].mxu1  ;;  %3705 = vst [vmem:[%s4910_s14 + $0x8] sm:$0xff] %v3553_v19  }
 0x3d0   : > { %v3628_v24 = vpack.c.bf16 %v2631_v22, %v2628_v16  ;;  %3549 = vst [vmem:[%s4910_s14] sm:$0xff] %v3548_v23  }
 0x3d1   : > { %3721 = vst [vmem:[%s4910_s14 + $0x88] sm:$0xff] %v3633_v20  }
 0x3d2   : > { %3720 = vst [vmem:[%s4910_s14 + $0x80] sm:$0xff] %v3628_v24   ;;  %v3798_v25 = vpop.f32.mrb[4].mxu0 }
 0x3d3   : > { %v2516_v27 = vpop.f32.mrb[5].mxu0 }
 0x3d4   : > { %v3830_v26 = vpop.f32.mrb[4].mxu1  ;;  %v3799_v29 = vpop.f32.mrb[6].mxu0 }
 0x3d5   : > { %v2644_v28 = vpop.f32.mrb[5].mxu1  ;;  %v3563_v31 = vpack.c.bf16 %v3799_v29, %v3798_v25  ;;  %v2519_v33 = vpop.f32.mrb[7].mxu0 }
 0x3d6   : > { %v3831_v30 = vpop.f32.mrb[6].mxu1  ;;  %v3558_v35 = vpack.c.bf16 %v2519_v33, %v2516_v27 }
 0x3d7   : > { %v3643_v32 = vpack.c.bf16 %v3831_v30, %v3830_v26  ;;  %v2647_v34 = vpop.f32.mrb[7].mxu1  ;;  %3707 = vst [vmem:[%s4910_s14 + $0x18] sm:$0xff] %v3563_v31  }
 0x3d8   : > { %v3638_v36 = vpack.c.bf16 %v2647_v34, %v2644_v28  ;;  %3706 = vst [vmem:[%s4910_s14 + $0x10] sm:$0xff] %v3558_v35  }
 0x3d9   : > { %3723 = vst [vmem:[%s4910_s14 + $0x98] sm:$0xff] %v3643_v32  }
 0x3da   : > { %3722 = vst [vmem:[%s4910_s14 + $0x90] sm:$0xff] %v3638_v36   ;;  %v3802_v37 = vpop.f32.mrb[8].mxu0 }
 0x3db   : > { %v2532_v39 = vpop.f32.mrb[9].mxu0 }
 0x3dc   : > { %v3834_v38 = vpop.f32.mrb[8].mxu1  ;;  %v3803_v42 = vpop.f32.mrb[10].mxu0 }
 0x3dd   : > { %v2660_v41 = vpop.f32.mrb[9].mxu1  ;;  %v3573_v44 = vpack.c.bf16 %v3803_v42, %v3802_v37  ;;  %v2535_v46 = vpop.f32.mrb[11].mxu0 }
 0x3de   : > { %v3835_v43 = vpop.f32.mrb[10].mxu1  ;;  %v3568_v48 = vpack.c.bf16 %v2535_v46, %v2532_v39 }
 0x3df   : > { %v3653_v45 = vpack.c.bf16 %v3835_v43, %v3834_v38  ;;  %v2663_v47 = vpop.f32.mrb[11].mxu1  ;;  %3709 = vst [vmem:[%s4910_s14 + $0x28] sm:$0xff] %v3573_v44  }
 0x3e0   : > { %v3648_v49 = vpack.c.bf16 %v2663_v47, %v2660_v41  ;;  %3708 = vst [vmem:[%s4910_s14 + $0x20] sm:$0xff] %v3568_v48  }
 0x3e1   : > { %3725 = vst [vmem:[%s4910_s14 + $0xa8] sm:$0xff] %v3653_v45  }
 0x3e2   : > { %3724 = vst [vmem:[%s4910_s14 + $0xa0] sm:$0xff] %v3648_v49   ;;  %v3806_v50 = vpop.f32.mrb[12].mxu0 }
 0x3e3   : > { %v2548_v52 = vpop.f32.mrb[13].mxu0 }
 0x3e4   : > { %v3838_v51 = vpop.f32.mrb[12].mxu1  ;;  %v3807_v54 = vpop.f32.mrb[14].mxu0 }
 0x3e5   : > { %v2676_v53 = vpop.f32.mrb[13].mxu1  ;;  %v3583_v56 = vpack.c.bf16 %v3807_v54, %v3806_v50  ;;  %v2551_v58 = vpop.f32.mrb[15].mxu0 }
 0x3e6   : > { %v3839_v55 = vpop.f32.mrb[14].mxu1  ;;  %v3578_v60 = vpack.c.bf16 %v2551_v58, %v2548_v52 }
 0x3e7   : > { %v3663_v57 = vpack.c.bf16 %v3839_v55, %v3838_v51  ;;  %v2679_v59 = vpop.f32.mrb[15].mxu1  ;;  %3711 = vst [vmem:[%s4910_s14 + $0x38] sm:$0xff] %v3583_v56  }
 0x3e8   : > { %v3658_v61 = vpack.c.bf16 %v2679_v59, %v2676_v53  ;;  %3710 = vst [vmem:[%s4910_s14 + $0x30] sm:$0xff] %v3578_v60  }
 0x3e9   : > { %3727 = vst [vmem:[%s4910_s14 + $0xb8] sm:$0xff] %v3663_v57  }
 0x3ea   : > { %3726 = vst [vmem:[%s4910_s14 + $0xb0] sm:$0xff] %v3658_v61   ;;  %v3810_v62 = vpop.f32.mrb[16].mxu0 }
 0x3eb   : > { %v2564_v0 = vpop.f32.mrb[17].mxu0 }
 0x3ec   : > { %v3842_v63 = vpop.f32.mrb[16].mxu1  ;;  %v3811_v2 = vpop.f32.mrb[18].mxu0 }
 0x3ed   : > { %v2692_v1 = vpop.f32.mrb[17].mxu1  ;;  %v3593_v4 = vpack.c.bf16 %v3811_v2, %v3810_v62  ;;  %v2567_v6 = vpop.f32.mrb[19].mxu0 }
 0x3ee   : > { %v3843_v3 = vpop.f32.mrb[18].mxu1  ;;  %v3588_v8 = vpack.c.bf16 %v2567_v6, %v2564_v0 }
 0x3ef   : > { %v3673_v5 = vpack.c.bf16 %v3843_v3, %v3842_v63  ;;  %v2695_v7 = vpop.f32.mrb[19].mxu1  ;;  %3713 = vst [vmem:[%s4910_s14 + $0x48] sm:$0xff] %v3593_v4  }
 0x3f0   : > { %v3668_v9 = vpack.c.bf16 %v2695_v7, %v2692_v1  ;;  %3712 = vst [vmem:[%s4910_s14 + $0x40] sm:$0xff] %v3588_v8  }
 0x3f1   : > { %3729 = vst [vmem:[%s4910_s14 + $0xc8] sm:$0xff] %v3673_v5  }
 0x3f2   : > { %3728 = vst [vmem:[%s4910_s14 + $0xc0] sm:$0xff] %v3668_v9   ;;  %v3814_v10 = vpop.f32.mrb[20].mxu0 }
 0x3f3   : > { %v2580_v12 = vpop.f32.mrb[21].mxu0 }
 0x3f4   : > { %v3846_v11 = vpop.f32.mrb[20].mxu1  ;;  %v3815_v14 = vpop.f32.mrb[22].mxu0 }
 0x3f5   : > { %v2708_v13 = vpop.f32.mrb[21].mxu1  ;;  %v3603_v15 = vpack.c.bf16 %v3815_v14, %v3814_v10  ;;  %v2583_v17 = vpop.f32.mrb[23].mxu0 }
 0x3f6   : > { %v3847_v40 = vpop.f32.mrb[22].mxu1  ;;  %v3598_v19 = vpack.c.bf16 %v2583_v17, %v2580_v12 }
 0x3f7   : > { %v3683_v16 = vpack.c.bf16 %v3847_v40, %v3846_v11  ;;  %v2711_v18 = vpop.f32.mrb[23].mxu1  ;;  %3715 = vst [vmem:[%s4910_s14 + $0x58] sm:$0xff] %v3603_v15  }
 0x3f8   : > { %v3678_v20 = vpack.c.bf16 %v2711_v18, %v2708_v13  ;;  %3714 = vst [vmem:[%s4910_s14 + $0x50] sm:$0xff] %v3598_v19  }
 0x3f9   : > { %3731 = vst [vmem:[%s4910_s14 + $0xd8] sm:$0xff] %v3683_v16  }
 0x3fa   : > { %3730 = vst [vmem:[%s4910_s14 + $0xd0] sm:$0xff] %v3678_v20   ;;  %v3818_v21 = vpop.f32.mrb[24].mxu0 }
 0x3fb   : > { %v2596_v23 = vpop.f32.mrb[25].mxu0 }
 0x3fc   : > { %v3850_v22 = vpop.f32.mrb[24].mxu1  ;;  %v3819_v25 = vpop.f32.mrb[26].mxu0 }
 0x3fd   : > { %v2724_v24 = vpop.f32.mrb[25].mxu1  ;;  %v3613_v27 = vpack.c.bf16 %v3819_v25, %v3818_v21  ;;  %v2599_v29 = vpop.f32.mrb[27].mxu0 }
 0x3fe   : > { %v3851_v26 = vpop.f32.mrb[26].mxu1  ;;  %v3608_v31 = vpack.c.bf16 %v2599_v29, %v2596_v23 }
 0x3ff   : > { %v3693_v28 = vpack.c.bf16 %v3851_v26, %v3850_v22  ;;  %v2727_v30 = vpop.f32.mrb[27].mxu1  ;;  %3717 = vst [vmem:[%s4910_s14 + $0x68] sm:$0xff] %v3613_v27  }
 0x400   : > { %v3688_v32 = vpack.c.bf16 %v2727_v30, %v2724_v24  ;;  %3716 = vst [vmem:[%s4910_s14 + $0x60] sm:$0xff] %v3608_v31  }
 0x401   : > { %3733 = vst [vmem:[%s4910_s14 + $0xe8] sm:$0xff] %v3693_v28  }
 0x402   : > { %3732 = vst [vmem:[%s4910_s14 + $0xe0] sm:$0xff] %v3688_v32   ;;  %v3822_v33 = vpop.f32.mrb[28].mxu0 }
 0x403   : > { %v2612_v35 = vpop.f32.mrb[29].mxu0 }
 0x404   : > { %v3854_v34 = vpop.f32.mrb[28].mxu1  ;;  %v3823_v37 = vpop.f32.mrb[30].mxu0 }
 0x405   : > { %v2740_v36 = vpop.f32.mrb[29].mxu1  ;;  %v3623_v39 = vpack.c.bf16 %v3823_v37, %v3822_v33  ;;  %v2615_v42 = vpop.f32.mrb[31].mxu0 }
 0x406   : > { %v3855_v38 = vpop.f32.mrb[30].mxu1  ;;  %v3618_v44 = vpack.c.bf16 %v2615_v42, %v2612_v35 }
 0x407   : > { %v3703_v41 = vpack.c.bf16 %v3855_v38, %v3854_v34  ;;  %v2743_v43 = vpop.f32.mrb[31].mxu1  ;;  %3719 = vst [vmem:[%s4910_s14 + $0x78] sm:$0xff] %v3623_v39  }
 0x408   : > { %v3698_v45 = vpack.c.bf16 %v2743_v43, %v2740_v36  ;;  %3718 = vst [vmem:[%s4910_s14 + $0x70] sm:$0xff] %v3618_v44  }
 0x409   : > { %3735 = vst [vmem:[%s4910_s14 + $0xf8] sm:$0xff] %v3703_v41  }
 0x40a   : > { %3734 = vst [vmem:[%s4910_s14 + $0xf0] sm:$0xff] %v3698_v45  }
 0x40b PF: > { %s5419_s4 = sld [smem:[#allocation20_spill]]  ;;  %s5421_s12 = sld [smem:[#allocation22_spill]] }
 0x40c   : > { %s5422_s3 = sld [smem:[#allocation29_spill]]  ;;  %s3089_s30 = sshll.u32 %s4910_s14, 4  ;;  %s5275_s30 = int_to_ptr.vmem [resolvable:$true] %s3089_s30 }
 0x40d   : > { %s5279_s25 = scalar_lea.sflag [#allocation5], %s297_s13  ;;  %s4381_s27 = scalar_lea.vmem %s5275_s30, 4096 }
 0x40e   : > { %p4382_p0 = scmp.ne.s32.totalorder %s5275_s30, %s4381_s27  ;;  %s4552_s18 = smov [#allocation11]  }
 0x40f   : > { %s4385_s10 = sshll.u32 %s4552_s18, 4  ;;  %s4386_s10 = int_to_ptr.vmem [resolvable:$false] %s4385_s10 }
 0x410   : > { %s4387_s8 = scalar_lea.vmem %s4386_s10, 8192  ;;  %p4388_p12 = scmp.lt.s32.totalorder %s5275_s30, %s4386_s10 }
 0x411   : > { %s3544_s15 = sshll.u32 %s5419_s4, 12  ;;  %p5423_p9 = scmp.ne.s32.totalorder %s5421_s12, 0 }
 0x412   : > { %s5272_s24 = scalar_lea.hbm %s5422_s3, %s3544_s15  ;;  %p4389_p3 = scmp.lt.s32.totalorder %s4387_s8, %s4381_s27 }
 0x413   : > { %p4383_p13 = pnand %p4382_p0, %p5423_p9 }
 0x414   : > { %p4390_p4 = por %p4389_p3, %p4388_p12 }
 0x415   : > { %p4384_p8 = pneg %p4383_p13 }
 0x417   : > { %p4391_p7 = pnand %p4390_p4, %p4384_p8 }
 0x419   : > { %4394 = shalt.err (!%p4391_p7)
}
 0x41a   : > { %s4395_s6 = scalar_lea.hbm %s5272_s24, 4096  ;;  %s4399_s14 = scalar_lea.hbm %s5422_s3, 8192 }
 0x41b   : > { %p4396_p6 = scmp.ne.s32.totalorder %s5272_s24, %s4395_s6  ;;  %p4400_p5 = scmp.lt.u32.totalorder %s5272_s24, %s5422_s3 }
 0x41c   : > { %p4401_p11 = scmp.lt.u32.totalorder %s4399_s14, %s4395_s6  ;;  %p4403_p0 = scmp.lt.u32.totalorder %s4395_s6, %s5272_s24 }
 0x41d   : > { %p4397_p1 = pnand %p4396_p6, %p5423_p9 }
 0x41e   : > { %p4402_p10 = por %p4401_p11, %p4400_p5 }
 0x41f   : > { %p4398_p2 = pneg %p4397_p1 }
 0x420   : > { %p4404_p13 = por %p4403_p0, %p4402_p10 }
 0x422   : > { %p4405_p8 = pnand %p4404_p13, %p4398_p2 }
 0x424   : > { %4408 = shalt.err (!%p4405_p8)
}
 0x425   : > { %s4553_s4 = smov 64   ;;  %s4554_s5 = smov 4  }
 0x426   : > { %3884 = dma.vmem_to_hbm [thread:$0]  (%p5423_p9), %s5275_s30, 4096, %s5272_s24, %s5279_s25, %s4553_s4, %s4553_s4, %s4554_s5  }
 0x427 PF: > { %s5424_s15 = sld [smem:[#allocation17_spill]]  ;;  %s5425_s11 = sld [smem:[#allocation23_spill]] }
 0x428   : > { %p3909_p12 = scmp.ge.s32.totalorder %s4539_s28, 2 }
 0x42d   : > { %s3104_s0 = sand.u32 1, %s5424_s15   ;;  %p5426_p3 = scmp.ne.s32.totalorder %s5425_s11, 0 }
 0x42e   : > { %s3105_s27 = scalar_lea.sflag [#allocation5], %s3104_s0 }
 0x42f   : > { %p3901_p4 = pnand %p3909_p12, %p5426_p3 }
 0x431   : > { %4482 = dma.done.wait (!%p3901_p4), %s3105_s27, 4096  }
 0x432   : > { %4484 = vsyncadd (!%p3901_p4), %s3105_s27, 4294963200  ;;  %s24_s28 = sadd.s32 1, %s4539_s28   ;;  %s5428_s15 = sld [smem:[#allocation18_spill]] }
 0x433   : > { %p5308_p7 = scmp.ge.s32.totalorder %s24_s28, 6   ;;  %s5429_s25 = sld [smem:[#allocation21_spill]] }
 0x434   : > { %s5430_s12 = sld [smem:[#allocation24_spill]]  ;;  %s5431_s27 = sld [smem:[#allocation25_spill]] }
 0x435   : > { %s5433_s16 = smov %s4495_s17  ;;  %s5434_s17 = smov %s4776_s21 }
 0x436   : > { %s5435_s18 = smov %s4503_s19  ;;  %s5436_s19 = smov %s4507_s20 }
 0x437   : > { %s5437_s20 = smov %s4832_s9  ;;  %s5438_s21 = smov %s4515_s22 }
 0x438   : > { %s5439_s22 = smov %s4519_s23  ;;  %s5440_s23 = smov %s4779_s2 }
 0x439   : > { %s5441_s24 = smov %s4531_s26  ;;  %23 = sbr.rel (!%p5308_p7) target bundleno = 18 (0x12), region = 110 }
 0x43a   : > { %s5442_s26 = smov %s5430_s12 }
 0x440   :  { %3110 = vsyncpa [#allocation4], 1 }
 0x441   :  { %3112 = vsyncpa [#allocation4 + $0x1], 1 }
 0x442   :  { %3113 = vsyncpa [#allocation7], 1 }
 0x443   :  { %3115 = vsyncpa [#allocation7 + $0x1], 1 }
 0x444   :  { %3116 = vsyncpa [#allocation10], 1 }
 0x445   :  { %3117 = vsyncpa [#allocation5], 1 }
 0x446   :  { %3119 = vsyncpa [#allocation5 + $0x1], 1 }

</bundles_post_ra>
